<compile_context>
chip_gen: v6e
topology: v6e:2x2x1
jax: 0.10.0
libtpu: 0.0.40
codegen_flags: <defaults>
</compile_context>

<pallas_src>
from functools import partial

import jax
import jax.numpy as jnp
from jax import lax
from jax.experimental import pallas as pl
from jax.experimental.pallas import tpu as pltpu


HIDDEN = 32   # lstm_hidden_dim
FC3    = 32   # fc3 output dim
UNROLL_T_MAX = 64


def lstm_kernel(x_ref, w_ih_ref, w_hh_ref, b_ref,
                fc3w_ref, fc3b_ref, fc4w_ref, fc4b_ref,
                out_ref, pre_ref, *, use_bf16=True):
    T, Bb = x_ref.shape               # (T, Bb) time-major, batch on lanes
    H = w_hh_ref.shape[0]
    G = 4 * H                         # 128 lanes exactly

    w_ih = w_ih_ref[...]              # (1, 4H) input weights (input_size == 1)
    bias = b_ref[...]                 # (1, 4H) = b_ih + b_hh
    w_hh = w_hh_ref[...]              # (H, 4H) recurrent weights (pre-transposed)
    w_hh_mm = w_hh.astype(jnp.bfloat16) if use_bf16 else w_hh

    # ---- One-time input projection for all timesteps -> VMEM scratch ------
    # x arrives lane-dense (batch on lanes); one transpose moves batch to
    # sublanes so each pre[t] slab is (Bb, 4H).  This is off the serial
    # recurrence and uses the otherwise-idle XLU slot.
    x_bt = x_ref[...].T                                   # (Bb, T)
    if T <= UNROLL_T_MAX:
        for t in range(T):                                # static slices
            pre_ref[t] = x_bt[:, t:t + 1] * w_ih + bias   # (Bb,1)*(1,G)+(1,G)
    else:
        @pl.loop(0, T)
        def _(t):
            col = lax.dynamic_slice_in_dim(x_bt, t, 1, axis=1)
            pre_ref[t] = col * w_ih + bias

    # ---- Serial recurrence -------------------------------------------------
    def step(t, carry):
        h, c = carry                                      # (Bb, H) each, f32
        lhs = h.astype(jnp.bfloat16) if use_bf16 else h
        gates = pre_ref[t] + jnp.dot(lhs, w_hh_mm,
                                     preferred_element_type=jnp.float32)  # (Bb, 4H)
        sig = jax.nn.sigmoid(gates)                       # one full-width EUP op
        i = sig[:, 0 * H:1 * H]
        f = sig[:, 1 * H:2 * H]
        o = sig[:, 3 * H:4 * H]
        g = jnp.tanh(gates[:, 2 * H:3 * H])
        c_new = f * c + i * g
        h_new = o * jnp.tanh(c_new)
        return (h_new, c_new)

    h0 = jnp.zeros((Bb, H), jnp.float32)
    c0 = jnp.zeros((Bb, H), jnp.float32)
    unroll = True if T <= UNROLL_T_MAX else 8
    h_last, _ = lax.fori_loop(0, T, step, (h0, c0), unroll=unroll)

    # ---- fc3 + relu (MXU), fc4 as VPU multiply + lane reduce ----------------
    fc3w = fc3w_ref[...]
    if use_bf16:
        hid = jnp.dot(h_last.astype(jnp.bfloat16), fc3w.astype(jnp.bfloat16),
                      preferred_element_type=jnp.float32) + fc3b_ref[...]
    else:
        hid = jnp.dot(h_last, fc3w,
                      preferred_element_type=jnp.float32) + fc3b_ref[...]
    hid = jnp.maximum(hid, 0.0)
    logit = jnp.sum(hid * fc4w_ref[...], axis=-1, keepdims=True) + fc4b_ref[...]
    # Lane-dense store: (Bb,1) -> (1,Bb), batch on lanes (unmasked vst).
    out_ref[...] = jax.nn.sigmoid(logit).T                # (1, Bb)


def _replicated_spec(shape):
    """Full-array block, same block every grid step (weights / biases)."""
    nd = len(shape)
    return pl.BlockSpec(shape, lambda i, nd=nd: (0,) * nd)


def _default_block_b(B):
    # 256 fills the v6e/v7x 256-wide MXU and (at B>=512) still gives >=2 grid
    # blocks so v7x's second TensorCore is used.  128 keeps >=2 blocks at
    # B=256..511 (and is the sweet spot for v5e's 4x128x128 MXU).  Small /
    # ragged batches fall back to a single full-batch block.
    if B >= 512 and B % 256 == 0:
        return 256
    if B >= 256 and B % 128 == 0:
        return 128
    return B


def lstm_forward(x, params, *, block_b=None, use_bf16=True):
    """x: (batch, seq, 1) float32, like the PyTorch module (batch_first=True)."""
    B, T, F = x.shape
    assert F == 1
    x_tb = jnp.transpose(x[..., 0])                       # (T, B), lane-dense batch

    if block_b is None:
        block_b = _default_block_b(B)
    assert B % block_b == 0, "batch must tile evenly into blocks"

    out = pl.pallas_call(
        partial(lstm_kernel, use_bf16=use_bf16),
        out_shape=jax.ShapeDtypeStruct((1, B), jnp.float32),
        grid=(B // block_b,),
        in_specs=[
            pl.BlockSpec((T, block_b), lambda i: (0, i)),          # x, batch on lanes
            _replicated_spec(params["w_ih"].shape),                # (1, 4H)
            _replicated_spec(params["w_hh_t"].shape),              # (H, 4H)
            _replicated_spec(params["bias"].shape),                # (1, 4H)
            _replicated_spec(params["fc3_w_t"].shape),             # (H, 32)
            _replicated_spec(params["fc3_b"].shape),               # (1, 32)
            _replicated_spec(params["fc4_w"].shape),               # (1, 32)
            _replicated_spec(params["fc4_b"].shape),               # (1, 1)
        ],
        out_specs=pl.BlockSpec((1, block_b), lambda i: (0, i)),    # lane-dense output
        scratch_shapes=[
            pltpu.VMEM((T, block_b, 4 * HIDDEN), jnp.float32),     # hoisted x*w_ih + b
        ],
        compiler_params=pltpu.CompilerParams(
            dimension_semantics=("parallel",)),
    )(
        x_tb,
        params["w_ih"],
        params["w_hh_t"],
        params["bias"],
        params["fc3_w_t"],
        params["fc3_b"],
        params["fc4_w"],
        params["fc4_b"],
    )
    # Matches PyTorch `.squeeze()`: (B,) for B > 1, scalar for B == 1.
    return jnp.squeeze(out)


def init_params(key, hidden=HIDDEN):
    """Deterministic synthetic parameters, PyTorch-style U(-1/sqrt(H), 1/sqrt(H))."""
    ks = jax.random.split(key, 8)
    s = 1.0 / jnp.sqrt(hidden)
    u = lambda k, shape: jax.random.uniform(k, shape, jnp.float32, -s, s)
    w_ih = u(ks[0], (4 * hidden, 1))           # torch weight_ih_l0 (4H, input=1)
    w_hh = u(ks[1], (4 * hidden, hidden))      # torch weight_hh_l0 (4H, H)
    b_ih = u(ks[2], (4 * hidden,))
    b_hh = u(ks[3], (4 * hidden,))
    fc3_w = u(ks[4], (FC3, hidden))            # torch Linear(H, 32).weight (32, H)
    fc3_b = u(ks[5], (FC3,))
    fc4_w = u(ks[6], (1, FC3))                 # torch Linear(32, 1).weight (1, 32)
    fc4_b = u(ks[7], (1,))
    return {
        "w_ih":    w_ih.T.reshape(1, 4 * hidden),      # (1, 4H)
        "w_hh_t":  w_hh.T,                             # (H, 4H)
        "bias":    (b_ih + b_hh).reshape(1, 4 * hidden),
        "fc3_w_t": fc3_w.T,                            # (H, 32)
        "fc3_b":   fc3_b.reshape(1, FC3),
        "fc4_w":   fc4_w,                              # (1, 32) — row layout for VPU reduce
        "fc4_b":   fc4_b.reshape(1, 1),
    }


def reference_forward(x, params):
    """Pure-JAX f32 reference of the PyTorch forward (for verification)."""
    x2d = x[..., 0]                                    # (B, T)
    B, T = x2d.shape
    H = HIDDEN
    w_ih, w_hh, b = params["w_ih"], params["w_hh_t"], params["bias"]

    def step(carry, x_t):
        h, c = carry
        gates = x_t[:, None] * w_ih + h @ w_hh + b
        i = jax.nn.sigmoid(gates[:, 0 * H:1 * H])
        f = jax.nn.sigmoid(gates[:, 1 * H:2 * H])
        g = jnp.tanh(gates[:, 2 * H:3 * H])
        o = jax.nn.sigmoid(gates[:, 3 * H:4 * H])
        c = f * c + i * g
        h = o * jnp.tanh(c)
        return (h, c), None

    (h, _), _ = lax.scan(step, (jnp.zeros((B, H)), jnp.zeros((B, H))), x2d.T)
    hid = jnp.maximum(h @ params["fc3_w_t"] + params["fc3_b"], 0.0)
    return jnp.squeeze(jax.nn.sigmoid(hid @ params["fc4_w"].T + params["fc4_b"]))


if __name__ == "__main__":
    key = jax.random.PRNGKey(0)
    k_x, k_p = jax.random.split(key)

    batch, seq = 8, 16
    x = jax.random.normal(k_x, (batch, seq, 1), jnp.float32)
    params = init_params(k_p)

    out = jax.block_until_ready(lstm_forward(x, params, use_bf16=True))
    ref = jax.block_until_ready(reference_forward(x, params))

    assert out.shape == (batch,)
    # bf16 MXU operands (f32 accumulate) vs the pure-f32 reference: relaxed tol.
    assert jnp.allclose(out, ref, atol=2e-2, rtol=2e-2), (out, ref)
    print("KERNEL_OK")
</pallas_src>

<mosaic_0001>
module attributes {stable_mosaic.version = 11 : i64} {
  func.func @lstm_kernel(%arg0: i32, %arg1: memref<16x8xf32, #tpu.memory_space<vmem>>, %arg2: memref<1x128xf32, #tpu.memory_space<vmem>>, %arg3: memref<32x128xf32, #tpu.memory_space<vmem>>, %arg4: memref<1x128xf32, #tpu.memory_space<vmem>>, %arg5: memref<32x32xf32, #tpu.memory_space<vmem>>, %arg6: memref<1x32xf32, #tpu.memory_space<vmem>>, %arg7: memref<1x32xf32, #tpu.memory_space<vmem>>, %arg8: memref<1x1xf32, #tpu.memory_space<vmem>>, %arg9: memref<1x8xf32, #tpu.memory_space<vmem>>, %arg10: memref<16x8x128xf32, #tpu.memory_space<vmem>>) attributes {dimension_semantics = [#tpu.dimension_semantics<parallel>], iteration_bounds = array<i64: 1>, scalar_prefetch = 0 : i64, scratch_operands = 1 : i64, tpu.core_type = #tpu.core_type<tc>, window_params = [{transform_indices = @transform_0, window_bounds = array<i64: 16, 8>}, {pipeline_mode = #tpu.pipeline_mode<synchronous>, transform_indices = @transform_1, window_bounds = array<i64: 1, 128>}, {pipeline_mode = #tpu.pipeline_mode<synchronous>, transform_indices = @transform_2, window_bounds = array<i64: 32, 128>}, {pipeline_mode = #tpu.pipeline_mode<synchronous>, transform_indices = @transform_3, window_bounds = array<i64: 1, 128>}, {pipeline_mode = #tpu.pipeline_mode<synchronous>, transform_indices = @transform_4, window_bounds = array<i64: 32, 32>}, {pipeline_mode = #tpu.pipeline_mode<synchronous>, transform_indices = @transform_5, window_bounds = array<i64: 1, 32>}, {pipeline_mode = #tpu.pipeline_mode<synchronous>, transform_indices = @transform_6, window_bounds = array<i64: 1, 32>}, {pipeline_mode = #tpu.pipeline_mode<synchronous>, transform_indices = @transform_7, window_bounds = array<i64: 1, 1>}, {transform_indices = @transform_8, window_bounds = array<i64: 1, 8>}]} {
    %c0 = arith.constant 0 : index
    %c0_0 = arith.constant 0 : index
    %0 = vector.load %arg2[%c0, %c0_0] : memref<1x128xf32, #tpu.memory_space<vmem>>, vector<1x128xf32>
    %c0_1 = arith.constant 0 : index
    %c0_2 = arith.constant 0 : index
    %1 = vector.load %arg4[%c0_1, %c0_2] : memref<1x128xf32, #tpu.memory_space<vmem>>, vector<1x128xf32>
    %c0_3 = arith.constant 0 : index
    %c0_4 = arith.constant 0 : index
    %2 = vector.load %arg3[%c0_3, %c0_4] : memref<32x128xf32, #tpu.memory_space<vmem>>, vector<32x128xf32>
    %3 = arith.truncf %2 : vector<32x128xf32> to vector<32x128xbf16>
    %c0_5 = arith.constant 0 : index
    %c0_6 = arith.constant 0 : index
    %4 = vector.load %arg1[%c0_5, %c0_6] : memref<16x8xf32, #tpu.memory_space<vmem>>, vector<16x8xf32>
    %5 = tpu.transpose %4, [1, 0] : vector<16x8xf32> -> vector<8x16xf32>
    %6 = vector.extract_strided_slice %5 {offsets = [0, 0], sizes = [8, 1], strides = [1, 1]} : vector<8x16xf32> to vector<8x1xf32>
    %7 = vector.broadcast %6 : vector<8x1xf32> to vector<8x128xf32>
    %8 = vector.broadcast %0 : vector<1x128xf32> to vector<8x128xf32>
    %9 = arith.mulf %7, %8 : vector<8x128xf32>
    %10 = vector.broadcast %1 : vector<1x128xf32> to vector<8x128xf32>
    %11 = arith.addf %9, %10 : vector<8x128xf32>
    %c0_7 = arith.constant 0 : index
    %c0_8 = arith.constant 0 : index
    %c0_9 = arith.constant 0 : index
    %12 = vector.load %arg10[%c0_7, %c0_8, %c0_9] : memref<16x8x128xf32, #tpu.memory_space<vmem>>, vector<1x8x128xf32>
    %13 = vector.shape_cast %12 : vector<1x8x128xf32> to vector<8x128xf32>
    %14 = vector.shape_cast %11 : vector<8x128xf32> to vector<1x8x128xf32>
    tpu.vector_store %arg10[%c0_7, %c0_8, %c0_9], %14 {strides = array<i32>} : memref<16x8x128xf32, #tpu.memory_space<vmem>>, vector<1x8x128xf32>,
    %15 = vector.extract_strided_slice %5 {offsets = [0, 1], sizes = [8, 1], strides = [1, 1]} : vector<8x16xf32> to vector<8x1xf32>
    %16 = vector.broadcast %15 : vector<8x1xf32> to vector<8x128xf32>
    %17 = vector.broadcast %0 : vector<1x128xf32> to vector<8x128xf32>
    %18 = arith.mulf %16, %17 : vector<8x128xf32>
    %19 = vector.broadcast %1 : vector<1x128xf32> to vector<8x128xf32>
    %20 = arith.addf %18, %19 : vector<8x128xf32>
    %c1 = arith.constant 1 : index
    %c0_10 = arith.constant 0 : index
    %c0_11 = arith.constant 0 : index
    %21 = vector.load %arg10[%c1, %c0_10, %c0_11] : memref<16x8x128xf32, #tpu.memory_space<vmem>>, vector<1x8x128xf32>
    %22 = vector.shape_cast %21 : vector<1x8x128xf32> to vector<8x128xf32>
    %23 = vector.shape_cast %20 : vector<8x128xf32> to vector<1x8x128xf32>
    tpu.vector_store %arg10[%c1, %c0_10, %c0_11], %23 {strides = array<i32>} : memref<16x8x128xf32, #tpu.memory_space<vmem>>, vector<1x8x128xf32>,
    %24 = vector.extract_strided_slice %5 {offsets = [0, 2], sizes = [8, 1], strides = [1, 1]} : vector<8x16xf32> to vector<8x1xf32>
    %25 = vector.broadcast %24 : vector<8x1xf32> to vector<8x128xf32>
    %26 = vector.broadcast %0 : vector<1x128xf32> to vector<8x128xf32>
    %27 = arith.mulf %25, %26 : vector<8x128xf32>
    %28 = vector.broadcast %1 : vector<1x128xf32> to vector<8x128xf32>
    %29 = arith.addf %27, %28 : vector<8x128xf32>
    %c2 = arith.constant 2 : index
    %c0_12 = arith.constant 0 : index
    %c0_13 = arith.constant 0 : index
    %30 = vector.load %arg10[%c2, %c0_12, %c0_13] : memref<16x8x128xf32, #tpu.memory_space<vmem>>, vector<1x8x128xf32>
    %31 = vector.shape_cast %30 : vector<1x8x128xf32> to vector<8x128xf32>
    %32 = vector.shape_cast %29 : vector<8x128xf32> to vector<1x8x128xf32>
    tpu.vector_store %arg10[%c2, %c0_12, %c0_13], %32 {strides = array<i32>} : memref<16x8x128xf32, #tpu.memory_space<vmem>>, vector<1x8x128xf32>,
    %33 = vector.extract_strided_slice %5 {offsets = [0, 3], sizes = [8, 1], strides = [1, 1]} : vector<8x16xf32> to vector<8x1xf32>
    %34 = vector.broadcast %33 : vector<8x1xf32> to vector<8x128xf32>
    %35 = vector.broadcast %0 : vector<1x128xf32> to vector<8x128xf32>
    %36 = arith.mulf %34, %35 : vector<8x128xf32>
    %37 = vector.broadcast %1 : vector<1x128xf32> to vector<8x128xf32>
    %38 = arith.addf %36, %37 : vector<8x128xf32>
    %c3 = arith.constant 3 : index
    %c0_14 = arith.constant 0 : index
    %c0_15 = arith.constant 0 : index
    %39 = vector.load %arg10[%c3, %c0_14, %c0_15] : memref<16x8x128xf32, #tpu.memory_space<vmem>>, vector<1x8x128xf32>
    %40 = vector.shape_cast %39 : vector<1x8x128xf32> to vector<8x128xf32>
    %41 = vector.shape_cast %38 : vector<8x128xf32> to vector<1x8x128xf32>
    tpu.vector_store %arg10[%c3, %c0_14, %c0_15], %41 {strides = array<i32>} : memref<16x8x128xf32, #tpu.memory_space<vmem>>, vector<1x8x128xf32>,
    %42 = vector.extract_strided_slice %5 {offsets = [0, 4], sizes = [8, 1], strides = [1, 1]} : vector<8x16xf32> to vector<8x1xf32>
    %43 = vector.broadcast %42 : vector<8x1xf32> to vector<8x128xf32>
    %44 = vector.broadcast %0 : vector<1x128xf32> to vector<8x128xf32>
    %45 = arith.mulf %43, %44 : vector<8x128xf32>
    %46 = vector.broadcast %1 : vector<1x128xf32> to vector<8x128xf32>
    %47 = arith.addf %45, %46 : vector<8x128xf32>
    %c4 = arith.constant 4 : index
    %c0_16 = arith.constant 0 : index
    %c0_17 = arith.constant 0 : index
    %48 = vector.load %arg10[%c4, %c0_16, %c0_17] : memref<16x8x128xf32, #tpu.memory_space<vmem>>, vector<1x8x128xf32>
    %49 = vector.shape_cast %48 : vector<1x8x128xf32> to vector<8x128xf32>
    %50 = vector.shape_cast %47 : vector<8x128xf32> to vector<1x8x128xf32>
    tpu.vector_store %arg10[%c4, %c0_16, %c0_17], %50 {strides = array<i32>} : memref<16x8x128xf32, #tpu.memory_space<vmem>>, vector<1x8x128xf32>,
    %51 = vector.extract_strided_slice %5 {offsets = [0, 5], sizes = [8, 1], strides = [1, 1]} : vector<8x16xf32> to vector<8x1xf32>
    %52 = vector.broadcast %51 : vector<8x1xf32> to vector<8x128xf32>
    %53 = vector.broadcast %0 : vector<1x128xf32> to vector<8x128xf32>
    %54 = arith.mulf %52, %53 : vector<8x128xf32>
    %55 = vector.broadcast %1 : vector<1x128xf32> to vector<8x128xf32>
    %56 = arith.addf %54, %55 : vector<8x128xf32>
    %c5 = arith.constant 5 : index
    %c0_18 = arith.constant 0 : index
    %c0_19 = arith.constant 0 : index
    %57 = vector.load %arg10[%c5, %c0_18, %c0_19] : memref<16x8x128xf32, #tpu.memory_space<vmem>>, vector<1x8x128xf32>
    %58 = vector.shape_cast %57 : vector<1x8x128xf32> to vector<8x128xf32>
    %59 = vector.shape_cast %56 : vector<8x128xf32> to vector<1x8x128xf32>
    tpu.vector_store %arg10[%c5, %c0_18, %c0_19], %59 {strides = array<i32>} : memref<16x8x128xf32, #tpu.memory_space<vmem>>, vector<1x8x128xf32>,
    %60 = vector.extract_strided_slice %5 {offsets = [0, 6], sizes = [8, 1], strides = [1, 1]} : vector<8x16xf32> to vector<8x1xf32>
    %61 = vector.broadcast %60 : vector<8x1xf32> to vector<8x128xf32>
    %62 = vector.broadcast %0 : vector<1x128xf32> to vector<8x128xf32>
    %63 = arith.mulf %61, %62 : vector<8x128xf32>
    %64 = vector.broadcast %1 : vector<1x128xf32> to vector<8x128xf32>
    %65 = arith.addf %63, %64 : vector<8x128xf32>
    %c6 = arith.constant 6 : index
    %c0_20 = arith.constant 0 : index
    %c0_21 = arith.constant 0 : index
    %66 = vector.load %arg10[%c6, %c0_20, %c0_21] : memref<16x8x128xf32, #tpu.memory_space<vmem>>, vector<1x8x128xf32>
    %67 = vector.shape_cast %66 : vector<1x8x128xf32> to vector<8x128xf32>
    %68 = vector.shape_cast %65 : vector<8x128xf32> to vector<1x8x128xf32>
    tpu.vector_store %arg10[%c6, %c0_20, %c0_21], %68 {strides = array<i32>} : memref<16x8x128xf32, #tpu.memory_space<vmem>>, vector<1x8x128xf32>,
    %69 = vector.extract_strided_slice %5 {offsets = [0, 7], sizes = [8, 1], strides = [1, 1]} : vector<8x16xf32> to vector<8x1xf32>
    %70 = vector.broadcast %69 : vector<8x1xf32> to vector<8x128xf32>
    %71 = vector.broadcast %0 : vector<1x128xf32> to vector<8x128xf32>
    %72 = arith.mulf %70, %71 : vector<8x128xf32>
    %73 = vector.broadcast %1 : vector<1x128xf32> to vector<8x128xf32>
    %74 = arith.addf %72, %73 : vector<8x128xf32>
    %c7 = arith.constant 7 : index
    %c0_22 = arith.constant 0 : index
    %c0_23 = arith.constant 0 : index
    %75 = vector.load %arg10[%c7, %c0_22, %c0_23] : memref<16x8x128xf32, #tpu.memory_space<vmem>>, vector<1x8x128xf32>
    %76 = vector.shape_cast %75 : vector<1x8x128xf32> to vector<8x128xf32>
    %77 = vector.shape_cast %74 : vector<8x128xf32> to vector<1x8x128xf32>
    tpu.vector_store %arg10[%c7, %c0_22, %c0_23], %77 {strides = array<i32>} : memref<16x8x128xf32, #tpu.memory_space<vmem>>, vector<1x8x128xf32>,
    %78 = vector.extract_strided_slice %5 {offsets = [0, 8], sizes = [8, 1], strides = [1, 1]} : vector<8x16xf32> to vector<8x1xf32>
    %79 = vector.broadcast %78 : vector<8x1xf32> to vector<8x128xf32>
    %80 = vector.broadcast %0 : vector<1x128xf32> to vector<8x128xf32>
    %81 = arith.mulf %79, %80 : vector<8x128xf32>
    %82 = vector.broadcast %1 : vector<1x128xf32> to vector<8x128xf32>
    %83 = arith.addf %81, %82 : vector<8x128xf32>
    %c8 = arith.constant 8 : index
    %c0_24 = arith.constant 0 : index
    %c0_25 = arith.constant 0 : index
    %84 = vector.load %arg10[%c8, %c0_24, %c0_25] : memref<16x8x128xf32, #tpu.memory_space<vmem>>, vector<1x8x128xf32>
    %85 = vector.shape_cast %84 : vector<1x8x128xf32> to vector<8x128xf32>
    %86 = vector.shape_cast %83 : vector<8x128xf32> to vector<1x8x128xf32>
    tpu.vector_store %arg10[%c8, %c0_24, %c0_25], %86 {strides = array<i32>} : memref<16x8x128xf32, #tpu.memory_space<vmem>>, vector<1x8x128xf32>,
    %87 = vector.extract_strided_slice %5 {offsets = [0, 9], sizes = [8, 1], strides = [1, 1]} : vector<8x16xf32> to vector<8x1xf32>
    %88 = vector.broadcast %87 : vector<8x1xf32> to vector<8x128xf32>
    %89 = vector.broadcast %0 : vector<1x128xf32> to vector<8x128xf32>
    %90 = arith.mulf %88, %89 : vector<8x128xf32>
    %91 = vector.broadcast %1 : vector<1x128xf32> to vector<8x128xf32>
    %92 = arith.addf %90, %91 : vector<8x128xf32>
    %c9 = arith.constant 9 : index
    %c0_26 = arith.constant 0 : index
    %c0_27 = arith.constant 0 : index
    %93 = vector.load %arg10[%c9, %c0_26, %c0_27] : memref<16x8x128xf32, #tpu.memory_space<vmem>>, vector<1x8x128xf32>
    %94 = vector.shape_cast %93 : vector<1x8x128xf32> to vector<8x128xf32>
    %95 = vector.shape_cast %92 : vector<8x128xf32> to vector<1x8x128xf32>
    tpu.vector_store %arg10[%c9, %c0_26, %c0_27], %95 {strides = array<i32>} : memref<16x8x128xf32, #tpu.memory_space<vmem>>, vector<1x8x128xf32>,
    %96 = vector.extract_strided_slice %5 {offsets = [0, 10], sizes = [8, 1], strides = [1, 1]} : vector<8x16xf32> to vector<8x1xf32>
    %97 = vector.broadcast %96 : vector<8x1xf32> to vector<8x128xf32>
    %98 = vector.broadcast %0 : vector<1x128xf32> to vector<8x128xf32>
    %99 = arith.mulf %97, %98 : vector<8x128xf32>
    %100 = vector.broadcast %1 : vector<1x128xf32> to vector<8x128xf32>
    %101 = arith.addf %99, %100 : vector<8x128xf32>
    %c10 = arith.constant 10 : index
    %c0_28 = arith.constant 0 : index
    %c0_29 = arith.constant 0 : index
    %102 = vector.load %arg10[%c10, %c0_28, %c0_29] : memref<16x8x128xf32, #tpu.memory_space<vmem>>, vector<1x8x128xf32>
    %103 = vector.shape_cast %102 : vector<1x8x128xf32> to vector<8x128xf32>
    %104 = vector.shape_cast %101 : vector<8x128xf32> to vector<1x8x128xf32>
    tpu.vector_store %arg10[%c10, %c0_28, %c0_29], %104 {strides = array<i32>} : memref<16x8x128xf32, #tpu.memory_space<vmem>>, vector<1x8x128xf32>,
    %105 = vector.extract_strided_slice %5 {offsets = [0, 11], sizes = [8, 1], strides = [1, 1]} : vector<8x16xf32> to vector<8x1xf32>
    %106 = vector.broadcast %105 : vector<8x1xf32> to vector<8x128xf32>
    %107 = vector.broadcast %0 : vector<1x128xf32> to vector<8x128xf32>
    %108 = arith.mulf %106, %107 : vector<8x128xf32>
    %109 = vector.broadcast %1 : vector<1x128xf32> to vector<8x128xf32>
    %110 = arith.addf %108, %109 : vector<8x128xf32>
    %c11 = arith.constant 11 : index
    %c0_30 = arith.constant 0 : index
    %c0_31 = arith.constant 0 : index
    %111 = vector.load %arg10[%c11, %c0_30, %c0_31] : memref<16x8x128xf32, #tpu.memory_space<vmem>>, vector<1x8x128xf32>
    %112 = vector.shape_cast %111 : vector<1x8x128xf32> to vector<8x128xf32>
    %113 = vector.shape_cast %110 : vector<8x128xf32> to vector<1x8x128xf32>
    tpu.vector_store %arg10[%c11, %c0_30, %c0_31], %113 {strides = array<i32>} : memref<16x8x128xf32, #tpu.memory_space<vmem>>, vector<1x8x128xf32>,
    %114 = vector.extract_strided_slice %5 {offsets = [0, 12], sizes = [8, 1], strides = [1, 1]} : vector<8x16xf32> to vector<8x1xf32>
    %115 = vector.broadcast %114 : vector<8x1xf32> to vector<8x128xf32>
    %116 = vector.broadcast %0 : vector<1x128xf32> to vector<8x128xf32>
    %117 = arith.mulf %115, %116 : vector<8x128xf32>
    %118 = vector.broadcast %1 : vector<1x128xf32> to vector<8x128xf32>
    %119 = arith.addf %117, %118 : vector<8x128xf32>
    %c12 = arith.constant 12 : index
    %c0_32 = arith.constant 0 : index
    %c0_33 = arith.constant 0 : index
    %120 = vector.load %arg10[%c12, %c0_32, %c0_33] : memref<16x8x128xf32, #tpu.memory_space<vmem>>, vector<1x8x128xf32>
    %121 = vector.shape_cast %120 : vector<1x8x128xf32> to vector<8x128xf32>
    %122 = vector.shape_cast %119 : vector<8x128xf32> to vector<1x8x128xf32>
    tpu.vector_store %arg10[%c12, %c0_32, %c0_33], %122 {strides = array<i32>} : memref<16x8x128xf32, #tpu.memory_space<vmem>>, vector<1x8x128xf32>,
    %123 = vector.extract_strided_slice %5 {offsets = [0, 13], sizes = [8, 1], strides = [1, 1]} : vector<8x16xf32> to vector<8x1xf32>
    %124 = vector.broadcast %123 : vector<8x1xf32> to vector<8x128xf32>
    %125 = vector.broadcast %0 : vector<1x128xf32> to vector<8x128xf32>
    %126 = arith.mulf %124, %125 : vector<8x128xf32>
    %127 = vector.broadcast %1 : vector<1x128xf32> to vector<8x128xf32>
    %128 = arith.addf %126, %127 : vector<8x128xf32>
    %c13 = arith.constant 13 : index
    %c0_34 = arith.constant 0 : index
    %c0_35 = arith.constant 0 : index
    %129 = vector.load %arg10[%c13, %c0_34, %c0_35] : memref<16x8x128xf32, #tpu.memory_space<vmem>>, vector<1x8x128xf32>
    %130 = vector.shape_cast %129 : vector<1x8x128xf32> to vector<8x128xf32>
    %131 = vector.shape_cast %128 : vector<8x128xf32> to vector<1x8x128xf32>
    tpu.vector_store %arg10[%c13, %c0_34, %c0_35], %131 {strides = array<i32>} : memref<16x8x128xf32, #tpu.memory_space<vmem>>, vector<1x8x128xf32>,
    %132 = vector.extract_strided_slice %5 {offsets = [0, 14], sizes = [8, 1], strides = [1, 1]} : vector<8x16xf32> to vector<8x1xf32>
    %133 = vector.broadcast %132 : vector<8x1xf32> to vector<8x128xf32>
    %134 = vector.broadcast %0 : vector<1x128xf32> to vector<8x128xf32>
    %135 = arith.mulf %133, %134 : vector<8x128xf32>
    %136 = vector.broadcast %1 : vector<1x128xf32> to vector<8x128xf32>
    %137 = arith.addf %135, %136 : vector<8x128xf32>
    %c14 = arith.constant 14 : index
    %c0_36 = arith.constant 0 : index
    %c0_37 = arith.constant 0 : index
    %138 = vector.load %arg10[%c14, %c0_36, %c0_37] : memref<16x8x128xf32, #tpu.memory_space<vmem>>, vector<1x8x128xf32>
    %139 = vector.shape_cast %138 : vector<1x8x128xf32> to vector<8x128xf32>
    %140 = vector.shape_cast %137 : vector<8x128xf32> to vector<1x8x128xf32>
    tpu.vector_store %arg10[%c14, %c0_36, %c0_37], %140 {strides = array<i32>} : memref<16x8x128xf32, #tpu.memory_space<vmem>>, vector<1x8x128xf32>,
    %141 = vector.extract_strided_slice %5 {offsets = [0, 15], sizes = [8, 1], strides = [1, 1]} : vector<8x16xf32> to vector<8x1xf32>
    %142 = vector.broadcast %141 : vector<8x1xf32> to vector<8x128xf32>
    %143 = vector.broadcast %0 : vector<1x128xf32> to vector<8x128xf32>
    %144 = arith.mulf %142, %143 : vector<8x128xf32>
    %145 = vector.broadcast %1 : vector<1x128xf32> to vector<8x128xf32>
    %146 = arith.addf %144, %145 : vector<8x128xf32>
    %c15 = arith.constant 15 : index
    %c0_38 = arith.constant 0 : index
    %c0_39 = arith.constant 0 : index
    %147 = vector.load %arg10[%c15, %c0_38, %c0_39] : memref<16x8x128xf32, #tpu.memory_space<vmem>>, vector<1x8x128xf32>
    %148 = vector.shape_cast %147 : vector<1x8x128xf32> to vector<8x128xf32>
    %149 = vector.shape_cast %146 : vector<8x128xf32> to vector<1x8x128xf32>
    tpu.vector_store %arg10[%c15, %c0_38, %c0_39], %149 {strides = array<i32>} : memref<16x8x128xf32, #tpu.memory_space<vmem>>, vector<1x8x128xf32>,
    %cst = arith.constant 0.000000e+00 : f32
    %150 = vector.broadcast %cst : f32 to vector<8x32xf32>
    %cst_40 = arith.constant 0.000000e+00 : f32
    %151 = vector.broadcast %cst_40 : f32 to vector<8x32xf32>
    %c0_i32 = arith.constant 0 : i32
    %152 = arith.truncf %150 : vector<8x32xf32> to vector<8x32xbf16>
    %153 = arith.index_cast %c0_i32 : i32 to index
    %c0_41 = arith.constant 0 : index
    %c0_42 = arith.constant 0 : index
    %154 = vector.load %arg10[%153, %c0_41, %c0_42] : memref<16x8x128xf32, #tpu.memory_space<vmem>>, vector<1x8x128xf32>
    %155 = vector.shape_cast %154 : vector<1x8x128xf32> to vector<8x128xf32>
    %cst_43 = arith.constant dense<0.000000e+00> : vector<8x128xf32>
    %156 = tpu.matmul %152, %3, %cst_43 {dimension_numbers = #tpu.dot_dimension_numbers<[1], [0], [0], [1], [0, 0, 1, 1], [], []>} : vector<8x32xbf16>, vector<32x128xbf16>, vector<8x128xf32> -> vector<8x128xf32>
    %157 = arith.addf %155, %156 : vector<8x128xf32>
    %158 = arith.negf %157 : vector<8x128xf32>
    %159 = math.exp %158 : vector<8x128xf32>
    %cst_44 = arith.constant 1.000000e+00 : f32
    %160 = vector.broadcast %cst_44 : f32 to vector<8x128xf32>
    %161 = arith.addf %160, %159 : vector<8x128xf32>
    %162 = arith.divf %160, %161 : vector<8x128xf32>
    %163 = vector.extract_strided_slice %162 {offsets = [0, 0], sizes = [8, 32], strides = [1, 1]} : vector<8x128xf32> to vector<8x32xf32>
    %164 = vector.extract_strided_slice %162 {offsets = [0, 32], sizes = [8, 32], strides = [1, 1]} : vector<8x128xf32> to vector<8x32xf32>
    %165 = vector.extract_strided_slice %162 {offsets = [0, 96], sizes = [8, 32], strides = [1, 1]} : vector<8x128xf32> to vector<8x32xf32>
    %166 = vector.extract_strided_slice %157 {offsets = [0, 64], sizes = [8, 32], strides = [1, 1]} : vector<8x128xf32> to vector<8x32xf32>
    %167 = math.tanh %166 : vector<8x32xf32>
    %168 = arith.mulf %164, %151 : vector<8x32xf32>
    %169 = arith.mulf %163, %167 : vector<8x32xf32>
    %170 = arith.addf %168, %169 : vector<8x32xf32>
    %171 = math.tanh %170 : vector<8x32xf32>
    %172 = arith.mulf %165, %171 : vector<8x32xf32>
    %c1_i32 = arith.constant 1 : i32
    %173 = arith.truncf %172 : vector<8x32xf32> to vector<8x32xbf16>
    %174 = arith.index_cast %c1_i32 : i32 to index
    %c0_45 = arith.constant 0 : index
    %c0_46 = arith.constant 0 : index
    %175 = vector.load %arg10[%174, %c0_45, %c0_46] : memref<16x8x128xf32, #tpu.memory_space<vmem>>, vector<1x8x128xf32>
    %176 = vector.shape_cast %175 : vector<1x8x128xf32> to vector<8x128xf32>
    %cst_47 = arith.constant dense<0.000000e+00> : vector<8x128xf32>
    %177 = tpu.matmul %173, %3, %cst_47 {dimension_numbers = #tpu.dot_dimension_numbers<[1], [0], [0], [1], [0, 0, 1, 1], [], []>} : vector<8x32xbf16>, vector<32x128xbf16>, vector<8x128xf32> -> vector<8x128xf32>
    %178 = arith.addf %176, %177 : vector<8x128xf32>
    %179 = arith.negf %178 : vector<8x128xf32>
    %180 = math.exp %179 : vector<8x128xf32>
    %cst_48 = arith.constant 1.000000e+00 : f32
    %181 = vector.broadcast %cst_48 : f32 to vector<8x128xf32>
    %182 = arith.addf %181, %180 : vector<8x128xf32>
    %183 = arith.divf %181, %182 : vector<8x128xf32>
    %184 = vector.extract_strided_slice %183 {offsets = [0, 0], sizes = [8, 32], strides = [1, 1]} : vector<8x128xf32> to vector<8x32xf32>
    %185 = vector.extract_strided_slice %183 {offsets = [0, 32], sizes = [8, 32], strides = [1, 1]} : vector<8x128xf32> to vector<8x32xf32>
    %186 = vector.extract_strided_slice %183 {offsets = [0, 96], sizes = [8, 32], strides = [1, 1]} : vector<8x128xf32> to vector<8x32xf32>
    %187 = vector.extract_strided_slice %178 {offsets = [0, 64], sizes = [8, 32], strides = [1, 1]} : vector<8x128xf32> to vector<8x32xf32>
    %188 = math.tanh %187 : vector<8x32xf32>
    %189 = arith.mulf %185, %170 : vector<8x32xf32>
    %190 = arith.mulf %184, %188 : vector<8x32xf32>
    %191 = arith.addf %189, %190 : vector<8x32xf32>
    %192 = math.tanh %191 : vector<8x32xf32>
    %193 = arith.mulf %186, %192 : vector<8x32xf32>
    %c2_i32 = arith.constant 2 : i32
    %194 = arith.truncf %193 : vector<8x32xf32> to vector<8x32xbf16>
    %195 = arith.index_cast %c2_i32 : i32 to index
    %c0_49 = arith.constant 0 : index
    %c0_50 = arith.constant 0 : index
    %196 = vector.load %arg10[%195, %c0_49, %c0_50] : memref<16x8x128xf32, #tpu.memory_space<vmem>>, vector<1x8x128xf32>
    %197 = vector.shape_cast %196 : vector<1x8x128xf32> to vector<8x128xf32>
    %cst_51 = arith.constant dense<0.000000e+00> : vector<8x128xf32>
    %198 = tpu.matmul %194, %3, %cst_51 {dimension_numbers = #tpu.dot_dimension_numbers<[1], [0], [0], [1], [0, 0, 1, 1], [], []>} : vector<8x32xbf16>, vector<32x128xbf16>, vector<8x128xf32> -> vector<8x128xf32>
    %199 = arith.addf %197, %198 : vector<8x128xf32>
    %200 = arith.negf %199 : vector<8x128xf32>
    %201 = math.exp %200 : vector<8x128xf32>
    %cst_52 = arith.constant 1.000000e+00 : f32
    %202 = vector.broadcast %cst_52 : f32 to vector<8x128xf32>
    %203 = arith.addf %202, %201 : vector<8x128xf32>
    %204 = arith.divf %202, %203 : vector<8x128xf32>
    %205 = vector.extract_strided_slice %204 {offsets = [0, 0], sizes = [8, 32], strides = [1, 1]} : vector<8x128xf32> to vector<8x32xf32>
    %206 = vector.extract_strided_slice %204 {offsets = [0, 32], sizes = [8, 32], strides = [1, 1]} : vector<8x128xf32> to vector<8x32xf32>
    %207 = vector.extract_strided_slice %204 {offsets = [0, 96], sizes = [8, 32], strides = [1, 1]} : vector<8x128xf32> to vector<8x32xf32>
    %208 = vector.extract_strided_slice %199 {offsets = [0, 64], sizes = [8, 32], strides = [1, 1]} : vector<8x128xf32> to vector<8x32xf32>
    %209 = math.tanh %208 : vector<8x32xf32>
    %210 = arith.mulf %206, %191 : vector<8x32xf32>
    %211 = arith.mulf %205, %209 : vector<8x32xf32>
    %212 = arith.addf %210, %211 : vector<8x32xf32>
    %213 = math.tanh %212 : vector<8x32xf32>
    %214 = arith.mulf %207, %213 : vector<8x32xf32>
    %c3_i32 = arith.constant 3 : i32
    %215 = arith.truncf %214 : vector<8x32xf32> to vector<8x32xbf16>
    %216 = arith.index_cast %c3_i32 : i32 to index
    %c0_53 = arith.constant 0 : index
    %c0_54 = arith.constant 0 : index
    %217 = vector.load %arg10[%216, %c0_53, %c0_54] : memref<16x8x128xf32, #tpu.memory_space<vmem>>, vector<1x8x128xf32>
    %218 = vector.shape_cast %217 : vector<1x8x128xf32> to vector<8x128xf32>
    %cst_55 = arith.constant dense<0.000000e+00> : vector<8x128xf32>
    %219 = tpu.matmul %215, %3, %cst_55 {dimension_numbers = #tpu.dot_dimension_numbers<[1], [0], [0], [1], [0, 0, 1, 1], [], []>} : vector<8x32xbf16>, vector<32x128xbf16>, vector<8x128xf32> -> vector<8x128xf32>
    %220 = arith.addf %218, %219 : vector<8x128xf32>
    %221 = arith.negf %220 : vector<8x128xf32>
    %222 = math.exp %221 : vector<8x128xf32>
    %cst_56 = arith.constant 1.000000e+00 : f32
    %223 = vector.broadcast %cst_56 : f32 to vector<8x128xf32>
    %224 = arith.addf %223, %222 : vector<8x128xf32>
    %225 = arith.divf %223, %224 : vector<8x128xf32>
    %226 = vector.extract_strided_slice %225 {offsets = [0, 0], sizes = [8, 32], strides = [1, 1]} : vector<8x128xf32> to vector<8x32xf32>
    %227 = vector.extract_strided_slice %225 {offsets = [0, 32], sizes = [8, 32], strides = [1, 1]} : vector<8x128xf32> to vector<8x32xf32>
    %228 = vector.extract_strided_slice %225 {offsets = [0, 96], sizes = [8, 32], strides = [1, 1]} : vector<8x128xf32> to vector<8x32xf32>
    %229 = vector.extract_strided_slice %220 {offsets = [0, 64], sizes = [8, 32], strides = [1, 1]} : vector<8x128xf32> to vector<8x32xf32>
    %230 = math.tanh %229 : vector<8x32xf32>
    %231 = arith.mulf %227, %212 : vector<8x32xf32>
    %232 = arith.mulf %226, %230 : vector<8x32xf32>
    %233 = arith.addf %231, %232 : vector<8x32xf32>
    %234 = math.tanh %233 : vector<8x32xf32>
    %235 = arith.mulf %228, %234 : vector<8x32xf32>
    %c4_i32 = arith.constant 4 : i32
    %236 = arith.truncf %235 : vector<8x32xf32> to vector<8x32xbf16>
    %237 = arith.index_cast %c4_i32 : i32 to index
    %c0_57 = arith.constant 0 : index
    %c0_58 = arith.constant 0 : index
    %238 = vector.load %arg10[%237, %c0_57, %c0_58] : memref<16x8x128xf32, #tpu.memory_space<vmem>>, vector<1x8x128xf32>
    %239 = vector.shape_cast %238 : vector<1x8x128xf32> to vector<8x128xf32>
    %cst_59 = arith.constant dense<0.000000e+00> : vector<8x128xf32>
    %240 = tpu.matmul %236, %3, %cst_59 {dimension_numbers = #tpu.dot_dimension_numbers<[1], [0], [0], [1], [0, 0, 1, 1], [], []>} : vector<8x32xbf16>, vector<32x128xbf16>, vector<8x128xf32> -> vector<8x128xf32>
    %241 = arith.addf %239, %240 : vector<8x128xf32>
    %242 = arith.negf %241 : vector<8x128xf32>
    %243 = math.exp %242 : vector<8x128xf32>
    %cst_60 = arith.constant 1.000000e+00 : f32
    %244 = vector.broadcast %cst_60 : f32 to vector<8x128xf32>
    %245 = arith.addf %244, %243 : vector<8x128xf32>
    %246 = arith.divf %244, %245 : vector<8x128xf32>
    %247 = vector.extract_strided_slice %246 {offsets = [0, 0], sizes = [8, 32], strides = [1, 1]} : vector<8x128xf32> to vector<8x32xf32>
    %248 = vector.extract_strided_slice %246 {offsets = [0, 32], sizes = [8, 32], strides = [1, 1]} : vector<8x128xf32> to vector<8x32xf32>
    %249 = vector.extract_strided_slice %246 {offsets = [0, 96], sizes = [8, 32], strides = [1, 1]} : vector<8x128xf32> to vector<8x32xf32>
    %250 = vector.extract_strided_slice %241 {offsets = [0, 64], sizes = [8, 32], strides = [1, 1]} : vector<8x128xf32> to vector<8x32xf32>
    %251 = math.tanh %250 : vector<8x32xf32>
    %252 = arith.mulf %248, %233 : vector<8x32xf32>
    %253 = arith.mulf %247, %251 : vector<8x32xf32>
    %254 = arith.addf %252, %253 : vector<8x32xf32>
    %255 = math.tanh %254 : vector<8x32xf32>
    %256 = arith.mulf %249, %255 : vector<8x32xf32>
    %c5_i32 = arith.constant 5 : i32
    %257 = arith.truncf %256 : vector<8x32xf32> to vector<8x32xbf16>
    %258 = arith.index_cast %c5_i32 : i32 to index
    %c0_61 = arith.constant 0 : index
    %c0_62 = arith.constant 0 : index
    %259 = vector.load %arg10[%258, %c0_61, %c0_62] : memref<16x8x128xf32, #tpu.memory_space<vmem>>, vector<1x8x128xf32>
    %260 = vector.shape_cast %259 : vector<1x8x128xf32> to vector<8x128xf32>
    %cst_63 = arith.constant dense<0.000000e+00> : vector<8x128xf32>
    %261 = tpu.matmul %257, %3, %cst_63 {dimension_numbers = #tpu.dot_dimension_numbers<[1], [0], [0], [1], [0, 0, 1, 1], [], []>} : vector<8x32xbf16>, vector<32x128xbf16>, vector<8x128xf32> -> vector<8x128xf32>
    %262 = arith.addf %260, %261 : vector<8x128xf32>
    %263 = arith.negf %262 : vector<8x128xf32>
    %264 = math.exp %263 : vector<8x128xf32>
    %cst_64 = arith.constant 1.000000e+00 : f32
    %265 = vector.broadcast %cst_64 : f32 to vector<8x128xf32>
    %266 = arith.addf %265, %264 : vector<8x128xf32>
    %267 = arith.divf %265, %266 : vector<8x128xf32>
    %268 = vector.extract_strided_slice %267 {offsets = [0, 0], sizes = [8, 32], strides = [1, 1]} : vector<8x128xf32> to vector<8x32xf32>
    %269 = vector.extract_strided_slice %267 {offsets = [0, 32], sizes = [8, 32], strides = [1, 1]} : vector<8x128xf32> to vector<8x32xf32>
    %270 = vector.extract_strided_slice %267 {offsets = [0, 96], sizes = [8, 32], strides = [1, 1]} : vector<8x128xf32> to vector<8x32xf32>
    %271 = vector.extract_strided_slice %262 {offsets = [0, 64], sizes = [8, 32], strides = [1, 1]} : vector<8x128xf32> to vector<8x32xf32>
    %272 = math.tanh %271 : vector<8x32xf32>
    %273 = arith.mulf %269, %254 : vector<8x32xf32>
    %274 = arith.mulf %268, %272 : vector<8x32xf32>
    %275 = arith.addf %273, %274 : vector<8x32xf32>
    %276 = math.tanh %275 : vector<8x32xf32>
    %277 = arith.mulf %270, %276 : vector<8x32xf32>
    %c6_i32 = arith.constant 6 : i32
    %278 = arith.truncf %277 : vector<8x32xf32> to vector<8x32xbf16>
    %279 = arith.index_cast %c6_i32 : i32 to index
    %c0_65 = arith.constant 0 : index
    %c0_66 = arith.constant 0 : index
    %280 = vector.load %arg10[%279, %c0_65, %c0_66] : memref<16x8x128xf32, #tpu.memory_space<vmem>>, vector<1x8x128xf32>
    %281 = vector.shape_cast %280 : vector<1x8x128xf32> to vector<8x128xf32>
    %cst_67 = arith.constant dense<0.000000e+00> : vector<8x128xf32>
    %282 = tpu.matmul %278, %3, %cst_67 {dimension_numbers = #tpu.dot_dimension_numbers<[1], [0], [0], [1], [0, 0, 1, 1], [], []>} : vector<8x32xbf16>, vector<32x128xbf16>, vector<8x128xf32> -> vector<8x128xf32>
    %283 = arith.addf %281, %282 : vector<8x128xf32>
    %284 = arith.negf %283 : vector<8x128xf32>
    %285 = math.exp %284 : vector<8x128xf32>
    %cst_68 = arith.constant 1.000000e+00 : f32
    %286 = vector.broadcast %cst_68 : f32 to vector<8x128xf32>
    %287 = arith.addf %286, %285 : vector<8x128xf32>
    %288 = arith.divf %286, %287 : vector<8x128xf32>
    %289 = vector.extract_strided_slice %288 {offsets = [0, 0], sizes = [8, 32], strides = [1, 1]} : vector<8x128xf32> to vector<8x32xf32>
    %290 = vector.extract_strided_slice %288 {offsets = [0, 32], sizes = [8, 32], strides = [1, 1]} : vector<8x128xf32> to vector<8x32xf32>
    %291 = vector.extract_strided_slice %288 {offsets = [0, 96], sizes = [8, 32], strides = [1, 1]} : vector<8x128xf32> to vector<8x32xf32>
    %292 = vector.extract_strided_slice %283 {offsets = [0, 64], sizes = [8, 32], strides = [1, 1]} : vector<8x128xf32> to vector<8x32xf32>
    %293 = math.tanh %292 : vector<8x32xf32>
    %294 = arith.mulf %290, %275 : vector<8x32xf32>
    %295 = arith.mulf %289, %293 : vector<8x32xf32>
    %296 = arith.addf %294, %295 : vector<8x32xf32>
    %297 = math.tanh %296 : vector<8x32xf32>
    %298 = arith.mulf %291, %297 : vector<8x32xf32>
    %c7_i32 = arith.constant 7 : i32
    %299 = arith.truncf %298 : vector<8x32xf32> to vector<8x32xbf16>
    %300 = arith.index_cast %c7_i32 : i32 to index
    %c0_69 = arith.constant 0 : index
    %c0_70 = arith.constant 0 : index
    %301 = vector.load %arg10[%300, %c0_69, %c0_70] : memref<16x8x128xf32, #tpu.memory_space<vmem>>, vector<1x8x128xf32>
    %302 = vector.shape_cast %301 : vector<1x8x128xf32> to vector<8x128xf32>
    %cst_71 = arith.constant dense<0.000000e+00> : vector<8x128xf32>
    %303 = tpu.matmul %299, %3, %cst_71 {dimension_numbers = #tpu.dot_dimension_numbers<[1], [0], [0], [1], [0, 0, 1, 1], [], []>} : vector<8x32xbf16>, vector<32x128xbf16>, vector<8x128xf32> -> vector<8x128xf32>
    %304 = arith.addf %302, %303 : vector<8x128xf32>
    %305 = arith.negf %304 : vector<8x128xf32>
    %306 = math.exp %305 : vector<8x128xf32>
    %cst_72 = arith.constant 1.000000e+00 : f32
    %307 = vector.broadcast %cst_72 : f32 to vector<8x128xf32>
    %308 = arith.addf %307, %306 : vector<8x128xf32>
    %309 = arith.divf %307, %308 : vector<8x128xf32>
    %310 = vector.extract_strided_slice %309 {offsets = [0, 0], sizes = [8, 32], strides = [1, 1]} : vector<8x128xf32> to vector<8x32xf32>
    %311 = vector.extract_strided_slice %309 {offsets = [0, 32], sizes = [8, 32], strides = [1, 1]} : vector<8x128xf32> to vector<8x32xf32>
    %312 = vector.extract_strided_slice %309 {offsets = [0, 96], sizes = [8, 32], strides = [1, 1]} : vector<8x128xf32> to vector<8x32xf32>
    %313 = vector.extract_strided_slice %304 {offsets = [0, 64], sizes = [8, 32], strides = [1, 1]} : vector<8x128xf32> to vector<8x32xf32>
    %314 = math.tanh %313 : vector<8x32xf32>
    %315 = arith.mulf %311, %296 : vector<8x32xf32>
    %316 = arith.mulf %310, %314 : vector<8x32xf32>
    %317 = arith.addf %315, %316 : vector<8x32xf32>
    %318 = math.tanh %317 : vector<8x32xf32>
    %319 = arith.mulf %312, %318 : vector<8x32xf32>
    %c8_i32 = arith.constant 8 : i32
    %320 = arith.truncf %319 : vector<8x32xf32> to vector<8x32xbf16>
    %321 = arith.index_cast %c8_i32 : i32 to index
    %c0_73 = arith.constant 0 : index
    %c0_74 = arith.constant 0 : index
    %322 = vector.load %arg10[%321, %c0_73, %c0_74] : memref<16x8x128xf32, #tpu.memory_space<vmem>>, vector<1x8x128xf32>
    %323 = vector.shape_cast %322 : vector<1x8x128xf32> to vector<8x128xf32>
    %cst_75 = arith.constant dense<0.000000e+00> : vector<8x128xf32>
    %324 = tpu.matmul %320, %3, %cst_75 {dimension_numbers = #tpu.dot_dimension_numbers<[1], [0], [0], [1], [0, 0, 1, 1], [], []>} : vector<8x32xbf16>, vector<32x128xbf16>, vector<8x128xf32> -> vector<8x128xf32>
    %325 = arith.addf %323, %324 : vector<8x128xf32>
    %326 = arith.negf %325 : vector<8x128xf32>
    %327 = math.exp %326 : vector<8x128xf32>
    %cst_76 = arith.constant 1.000000e+00 : f32
    %328 = vector.broadcast %cst_76 : f32 to vector<8x128xf32>
    %329 = arith.addf %328, %327 : vector<8x128xf32>
    %330 = arith.divf %328, %329 : vector<8x128xf32>
    %331 = vector.extract_strided_slice %330 {offsets = [0, 0], sizes = [8, 32], strides = [1, 1]} : vector<8x128xf32> to vector<8x32xf32>
    %332 = vector.extract_strided_slice %330 {offsets = [0, 32], sizes = [8, 32], strides = [1, 1]} : vector<8x128xf32> to vector<8x32xf32>
    %333 = vector.extract_strided_slice %330 {offsets = [0, 96], sizes = [8, 32], strides = [1, 1]} : vector<8x128xf32> to vector<8x32xf32>
    %334 = vector.extract_strided_slice %325 {offsets = [0, 64], sizes = [8, 32], strides = [1, 1]} : vector<8x128xf32> to vector<8x32xf32>
    %335 = math.tanh %334 : vector<8x32xf32>
    %336 = arith.mulf %332, %317 : vector<8x32xf32>
    %337 = arith.mulf %331, %335 : vector<8x32xf32>
    %338 = arith.addf %336, %337 : vector<8x32xf32>
    %339 = math.tanh %338 : vector<8x32xf32>
    %340 = arith.mulf %333, %339 : vector<8x32xf32>
    %c9_i32 = arith.constant 9 : i32
    %341 = arith.truncf %340 : vector<8x32xf32> to vector<8x32xbf16>
    %342 = arith.index_cast %c9_i32 : i32 to index
    %c0_77 = arith.constant 0 : index
    %c0_78 = arith.constant 0 : index
    %343 = vector.load %arg10[%342, %c0_77, %c0_78] : memref<16x8x128xf32, #tpu.memory_space<vmem>>, vector<1x8x128xf32>
    %344 = vector.shape_cast %343 : vector<1x8x128xf32> to vector<8x128xf32>
    %cst_79 = arith.constant dense<0.000000e+00> : vector<8x128xf32>
    %345 = tpu.matmul %341, %3, %cst_79 {dimension_numbers = #tpu.dot_dimension_numbers<[1], [0], [0], [1], [0, 0, 1, 1], [], []>} : vector<8x32xbf16>, vector<32x128xbf16>, vector<8x128xf32> -> vector<8x128xf32>
    %346 = arith.addf %344, %345 : vector<8x128xf32>
    %347 = arith.negf %346 : vector<8x128xf32>
    %348 = math.exp %347 : vector<8x128xf32>
    %cst_80 = arith.constant 1.000000e+00 : f32
    %349 = vector.broadcast %cst_80 : f32 to vector<8x128xf32>
    %350 = arith.addf %349, %348 : vector<8x128xf32>
    %351 = arith.divf %349, %350 : vector<8x128xf32>
    %352 = vector.extract_strided_slice %351 {offsets = [0, 0], sizes = [8, 32], strides = [1, 1]} : vector<8x128xf32> to vector<8x32xf32>
    %353 = vector.extract_strided_slice %351 {offsets = [0, 32], sizes = [8, 32], strides = [1, 1]} : vector<8x128xf32> to vector<8x32xf32>
    %354 = vector.extract_strided_slice %351 {offsets = [0, 96], sizes = [8, 32], strides = [1, 1]} : vector<8x128xf32> to vector<8x32xf32>
    %355 = vector.extract_strided_slice %346 {offsets = [0, 64], sizes = [8, 32], strides = [1, 1]} : vector<8x128xf32> to vector<8x32xf32>
    %356 = math.tanh %355 : vector<8x32xf32>
    %357 = arith.mulf %353, %338 : vector<8x32xf32>
    %358 = arith.mulf %352, %356 : vector<8x32xf32>
    %359 = arith.addf %357, %358 : vector<8x32xf32>
    %360 = math.tanh %359 : vector<8x32xf32>
    %361 = arith.mulf %354, %360 : vector<8x32xf32>
    %c10_i32 = arith.constant 10 : i32
    %362 = arith.truncf %361 : vector<8x32xf32> to vector<8x32xbf16>
    %363 = arith.index_cast %c10_i32 : i32 to index
    %c0_81 = arith.constant 0 : index
    %c0_82 = arith.constant 0 : index
    %364 = vector.load %arg10[%363, %c0_81, %c0_82] : memref<16x8x128xf32, #tpu.memory_space<vmem>>, vector<1x8x128xf32>
    %365 = vector.shape_cast %364 : vector<1x8x128xf32> to vector<8x128xf32>
    %cst_83 = arith.constant dense<0.000000e+00> : vector<8x128xf32>
    %366 = tpu.matmul %362, %3, %cst_83 {dimension_numbers = #tpu.dot_dimension_numbers<[1], [0], [0], [1], [0, 0, 1, 1], [], []>} : vector<8x32xbf16>, vector<32x128xbf16>, vector<8x128xf32> -> vector<8x128xf32>
    %367 = arith.addf %365, %366 : vector<8x128xf32>
    %368 = arith.negf %367 : vector<8x128xf32>
    %369 = math.exp %368 : vector<8x128xf32>
    %cst_84 = arith.constant 1.000000e+00 : f32
    %370 = vector.broadcast %cst_84 : f32 to vector<8x128xf32>
    %371 = arith.addf %370, %369 : vector<8x128xf32>
    %372 = arith.divf %370, %371 : vector<8x128xf32>
    %373 = vector.extract_strided_slice %372 {offsets = [0, 0], sizes = [8, 32], strides = [1, 1]} : vector<8x128xf32> to vector<8x32xf32>
    %374 = vector.extract_strided_slice %372 {offsets = [0, 32], sizes = [8, 32], strides = [1, 1]} : vector<8x128xf32> to vector<8x32xf32>
    %375 = vector.extract_strided_slice %372 {offsets = [0, 96], sizes = [8, 32], strides = [1, 1]} : vector<8x128xf32> to vector<8x32xf32>
    %376 = vector.extract_strided_slice %367 {offsets = [0, 64], sizes = [8, 32], strides = [1, 1]} : vector<8x128xf32> to vector<8x32xf32>
    %377 = math.tanh %376 : vector<8x32xf32>
    %378 = arith.mulf %374, %359 : vector<8x32xf32>
    %379 = arith.mulf %373, %377 : vector<8x32xf32>
    %380 = arith.addf %378, %379 : vector<8x32xf32>
    %381 = math.tanh %380 : vector<8x32xf32>
    %382 = arith.mulf %375, %381 : vector<8x32xf32>
    %c11_i32 = arith.constant 11 : i32
    %383 = arith.truncf %382 : vector<8x32xf32> to vector<8x32xbf16>
    %384 = arith.index_cast %c11_i32 : i32 to index
    %c0_85 = arith.constant 0 : index
    %c0_86 = arith.constant 0 : index
    %385 = vector.load %arg10[%384, %c0_85, %c0_86] : memref<16x8x128xf32, #tpu.memory_space<vmem>>, vector<1x8x128xf32>
    %386 = vector.shape_cast %385 : vector<1x8x128xf32> to vector<8x128xf32>
    %cst_87 = arith.constant dense<0.000000e+00> : vector<8x128xf32>
    %387 = tpu.matmul %383, %3, %cst_87 {dimension_numbers = #tpu.dot_dimension_numbers<[1], [0], [0], [1], [0, 0, 1, 1], [], []>} : vector<8x32xbf16>, vector<32x128xbf16>, vector<8x128xf32> -> vector<8x128xf32>
    %388 = arith.addf %386, %387 : vector<8x128xf32>
    %389 = arith.negf %388 : vector<8x128xf32>
    %390 = math.exp %389 : vector<8x128xf32>
    %cst_88 = arith.constant 1.000000e+00 : f32
    %391 = vector.broadcast %cst_88 : f32 to vector<8x128xf32>
    %392 = arith.addf %391, %390 : vector<8x128xf32>
    %393 = arith.divf %391, %392 : vector<8x128xf32>
    %394 = vector.extract_strided_slice %393 {offsets = [0, 0], sizes = [8, 32], strides = [1, 1]} : vector<8x128xf32> to vector<8x32xf32>
    %395 = vector.extract_strided_slice %393 {offsets = [0, 32], sizes = [8, 32], strides = [1, 1]} : vector<8x128xf32> to vector<8x32xf32>
    %396 = vector.extract_strided_slice %393 {offsets = [0, 96], sizes = [8, 32], strides = [1, 1]} : vector<8x128xf32> to vector<8x32xf32>
    %397 = vector.extract_strided_slice %388 {offsets = [0, 64], sizes = [8, 32], strides = [1, 1]} : vector<8x128xf32> to vector<8x32xf32>
    %398 = math.tanh %397 : vector<8x32xf32>
    %399 = arith.mulf %395, %380 : vector<8x32xf32>
    %400 = arith.mulf %394, %398 : vector<8x32xf32>
    %401 = arith.addf %399, %400 : vector<8x32xf32>
    %402 = math.tanh %401 : vector<8x32xf32>
    %403 = arith.mulf %396, %402 : vector<8x32xf32>
    %c12_i32 = arith.constant 12 : i32
    %404 = arith.truncf %403 : vector<8x32xf32> to vector<8x32xbf16>
    %405 = arith.index_cast %c12_i32 : i32 to index
    %c0_89 = arith.constant 0 : index
    %c0_90 = arith.constant 0 : index
    %406 = vector.load %arg10[%405, %c0_89, %c0_90] : memref<16x8x128xf32, #tpu.memory_space<vmem>>, vector<1x8x128xf32>
    %407 = vector.shape_cast %406 : vector<1x8x128xf32> to vector<8x128xf32>
    %cst_91 = arith.constant dense<0.000000e+00> : vector<8x128xf32>
    %408 = tpu.matmul %404, %3, %cst_91 {dimension_numbers = #tpu.dot_dimension_numbers<[1], [0], [0], [1], [0, 0, 1, 1], [], []>} : vector<8x32xbf16>, vector<32x128xbf16>, vector<8x128xf32> -> vector<8x128xf32>
    %409 = arith.addf %407, %408 : vector<8x128xf32>
    %410 = arith.negf %409 : vector<8x128xf32>
    %411 = math.exp %410 : vector<8x128xf32>
    %cst_92 = arith.constant 1.000000e+00 : f32
    %412 = vector.broadcast %cst_92 : f32 to vector<8x128xf32>
    %413 = arith.addf %412, %411 : vector<8x128xf32>
    %414 = arith.divf %412, %413 : vector<8x128xf32>
    %415 = vector.extract_strided_slice %414 {offsets = [0, 0], sizes = [8, 32], strides = [1, 1]} : vector<8x128xf32> to vector<8x32xf32>
    %416 = vector.extract_strided_slice %414 {offsets = [0, 32], sizes = [8, 32], strides = [1, 1]} : vector<8x128xf32> to vector<8x32xf32>
    %417 = vector.extract_strided_slice %414 {offsets = [0, 96], sizes = [8, 32], strides = [1, 1]} : vector<8x128xf32> to vector<8x32xf32>
    %418 = vector.extract_strided_slice %409 {offsets = [0, 64], sizes = [8, 32], strides = [1, 1]} : vector<8x128xf32> to vector<8x32xf32>
    %419 = math.tanh %418 : vector<8x32xf32>
    %420 = arith.mulf %416, %401 : vector<8x32xf32>
    %421 = arith.mulf %415, %419 : vector<8x32xf32>
    %422 = arith.addf %420, %421 : vector<8x32xf32>
    %423 = math.tanh %422 : vector<8x32xf32>
    %424 = arith.mulf %417, %423 : vector<8x32xf32>
    %c13_i32 = arith.constant 13 : i32
    %425 = arith.truncf %424 : vector<8x32xf32> to vector<8x32xbf16>
    %426 = arith.index_cast %c13_i32 : i32 to index
    %c0_93 = arith.constant 0 : index
    %c0_94 = arith.constant 0 : index
    %427 = vector.load %arg10[%426, %c0_93, %c0_94] : memref<16x8x128xf32, #tpu.memory_space<vmem>>, vector<1x8x128xf32>
    %428 = vector.shape_cast %427 : vector<1x8x128xf32> to vector<8x128xf32>
    %cst_95 = arith.constant dense<0.000000e+00> : vector<8x128xf32>
    %429 = tpu.matmul %425, %3, %cst_95 {dimension_numbers = #tpu.dot_dimension_numbers<[1], [0], [0], [1], [0, 0, 1, 1], [], []>} : vector<8x32xbf16>, vector<32x128xbf16>, vector<8x128xf32> -> vector<8x128xf32>
    %430 = arith.addf %428, %429 : vector<8x128xf32>
    %431 = arith.negf %430 : vector<8x128xf32>
    %432 = math.exp %431 : vector<8x128xf32>
    %cst_96 = arith.constant 1.000000e+00 : f32
    %433 = vector.broadcast %cst_96 : f32 to vector<8x128xf32>
    %434 = arith.addf %433, %432 : vector<8x128xf32>
    %435 = arith.divf %433, %434 : vector<8x128xf32>
    %436 = vector.extract_strided_slice %435 {offsets = [0, 0], sizes = [8, 32], strides = [1, 1]} : vector<8x128xf32> to vector<8x32xf32>
    %437 = vector.extract_strided_slice %435 {offsets = [0, 32], sizes = [8, 32], strides = [1, 1]} : vector<8x128xf32> to vector<8x32xf32>
    %438 = vector.extract_strided_slice %435 {offsets = [0, 96], sizes = [8, 32], strides = [1, 1]} : vector<8x128xf32> to vector<8x32xf32>
    %439 = vector.extract_strided_slice %430 {offsets = [0, 64], sizes = [8, 32], strides = [1, 1]} : vector<8x128xf32> to vector<8x32xf32>
    %440 = math.tanh %439 : vector<8x32xf32>
    %441 = arith.mulf %437, %422 : vector<8x32xf32>
    %442 = arith.mulf %436, %440 : vector<8x32xf32>
    %443 = arith.addf %441, %442 : vector<8x32xf32>
    %444 = math.tanh %443 : vector<8x32xf32>
    %445 = arith.mulf %438, %444 : vector<8x32xf32>
    %c14_i32 = arith.constant 14 : i32
    %446 = arith.truncf %445 : vector<8x32xf32> to vector<8x32xbf16>
    %447 = arith.index_cast %c14_i32 : i32 to index
    %c0_97 = arith.constant 0 : index
    %c0_98 = arith.constant 0 : index
    %448 = vector.load %arg10[%447, %c0_97, %c0_98] : memref<16x8x128xf32, #tpu.memory_space<vmem>>, vector<1x8x128xf32>
    %449 = vector.shape_cast %448 : vector<1x8x128xf32> to vector<8x128xf32>
    %cst_99 = arith.constant dense<0.000000e+00> : vector<8x128xf32>
    %450 = tpu.matmul %446, %3, %cst_99 {dimension_numbers = #tpu.dot_dimension_numbers<[1], [0], [0], [1], [0, 0, 1, 1], [], []>} : vector<8x32xbf16>, vector<32x128xbf16>, vector<8x128xf32> -> vector<8x128xf32>
    %451 = arith.addf %449, %450 : vector<8x128xf32>
    %452 = arith.negf %451 : vector<8x128xf32>
    %453 = math.exp %452 : vector<8x128xf32>
    %cst_100 = arith.constant 1.000000e+00 : f32
    %454 = vector.broadcast %cst_100 : f32 to vector<8x128xf32>
    %455 = arith.addf %454, %453 : vector<8x128xf32>
    %456 = arith.divf %454, %455 : vector<8x128xf32>
    %457 = vector.extract_strided_slice %456 {offsets = [0, 0], sizes = [8, 32], strides = [1, 1]} : vector<8x128xf32> to vector<8x32xf32>
    %458 = vector.extract_strided_slice %456 {offsets = [0, 32], sizes = [8, 32], strides = [1, 1]} : vector<8x128xf32> to vector<8x32xf32>
    %459 = vector.extract_strided_slice %456 {offsets = [0, 96], sizes = [8, 32], strides = [1, 1]} : vector<8x128xf32> to vector<8x32xf32>
    %460 = vector.extract_strided_slice %451 {offsets = [0, 64], sizes = [8, 32], strides = [1, 1]} : vector<8x128xf32> to vector<8x32xf32>
    %461 = math.tanh %460 : vector<8x32xf32>
    %462 = arith.mulf %458, %443 : vector<8x32xf32>
    %463 = arith.mulf %457, %461 : vector<8x32xf32>
    %464 = arith.addf %462, %463 : vector<8x32xf32>
    %465 = math.tanh %464 : vector<8x32xf32>
    %466 = arith.mulf %459, %465 : vector<8x32xf32>
    %c15_i32 = arith.constant 15 : i32
    %467 = arith.truncf %466 : vector<8x32xf32> to vector<8x32xbf16>
    %468 = arith.index_cast %c15_i32 : i32 to index
    %c0_101 = arith.constant 0 : index
    %c0_102 = arith.constant 0 : index
    %469 = vector.load %arg10[%468, %c0_101, %c0_102] : memref<16x8x128xf32, #tpu.memory_space<vmem>>, vector<1x8x128xf32>
    %470 = vector.shape_cast %469 : vector<1x8x128xf32> to vector<8x128xf32>
    %cst_103 = arith.constant dense<0.000000e+00> : vector<8x128xf32>
    %471 = tpu.matmul %467, %3, %cst_103 {dimension_numbers = #tpu.dot_dimension_numbers<[1], [0], [0], [1], [0, 0, 1, 1], [], []>} : vector<8x32xbf16>, vector<32x128xbf16>, vector<8x128xf32> -> vector<8x128xf32>
    %472 = arith.addf %470, %471 : vector<8x128xf32>
    %473 = arith.negf %472 : vector<8x128xf32>
    %474 = math.exp %473 : vector<8x128xf32>
    %cst_104 = arith.constant 1.000000e+00 : f32
    %475 = vector.broadcast %cst_104 : f32 to vector<8x128xf32>
    %476 = arith.addf %475, %474 : vector<8x128xf32>
    %477 = arith.divf %475, %476 : vector<8x128xf32>
    %478 = vector.extract_strided_slice %477 {offsets = [0, 0], sizes = [8, 32], strides = [1, 1]} : vector<8x128xf32> to vector<8x32xf32>
    %479 = vector.extract_strided_slice %477 {offsets = [0, 32], sizes = [8, 32], strides = [1, 1]} : vector<8x128xf32> to vector<8x32xf32>
    %480 = vector.extract_strided_slice %477 {offsets = [0, 96], sizes = [8, 32], strides = [1, 1]} : vector<8x128xf32> to vector<8x32xf32>
    %481 = vector.extract_strided_slice %472 {offsets = [0, 64], sizes = [8, 32], strides = [1, 1]} : vector<8x128xf32> to vector<8x32xf32>
    %482 = math.tanh %481 : vector<8x32xf32>
    %483 = arith.mulf %479, %464 : vector<8x32xf32>
    %484 = arith.mulf %478, %482 : vector<8x32xf32>
    %485 = arith.addf %483, %484 : vector<8x32xf32>
    %486 = math.tanh %485 : vector<8x32xf32>
    %487 = arith.mulf %480, %486 : vector<8x32xf32>
    %c16_i32 = arith.constant 16 : i32
    %c0_105 = arith.constant 0 : index
    %c0_106 = arith.constant 0 : index
    %488 = vector.load %arg5[%c0_105, %c0_106] : memref<32x32xf32, #tpu.memory_space<vmem>>, vector<32x32xf32>
    %489 = arith.truncf %487 : vector<8x32xf32> to vector<8x32xbf16>
    %490 = arith.truncf %488 : vector<32x32xf32> to vector<32x32xbf16>
    %cst_107 = arith.constant dense<0.000000e+00> : vector<8x32xf32>
    %491 = tpu.matmul %489, %490, %cst_107 {dimension_numbers = #tpu.dot_dimension_numbers<[1], [0], [0], [1], [0, 0, 1, 1], [], []>} : vector<8x32xbf16>, vector<32x32xbf16>, vector<8x32xf32> -> vector<8x32xf32>
    %c0_108 = arith.constant 0 : index
    %c0_109 = arith.constant 0 : index
    %492 = vector.load %arg6[%c0_108, %c0_109] : memref<1x32xf32, #tpu.memory_space<vmem>>, vector<1x32xf32>
    %493 = vector.broadcast %492 : vector<1x32xf32> to vector<8x32xf32>
    %494 = arith.addf %491, %493 : vector<8x32xf32>
    %cst_110 = arith.constant 0.000000e+00 : f32
    %495 = vector.broadcast %cst_110 : f32 to vector<8x32xf32>
    %496 = arith.maximumf %494, %495 : vector<8x32xf32>
    %c0_111 = arith.constant 0 : index
    %c0_112 = arith.constant 0 : index
    %497 = vector.load %arg7[%c0_111, %c0_112] : memref<1x32xf32, #tpu.memory_space<vmem>>, vector<1x32xf32>
    %498 = vector.broadcast %497 : vector<1x32xf32> to vector<8x32xf32>
    %499 = arith.mulf %496, %498 : vector<8x32xf32>
    %cst_113 = arith.constant dense<0.000000e+00> : vector<8xf32>
    %500 = vector.multi_reduction <add>, %499, %cst_113 [1] : vector<8x32xf32> to vector<8xf32>
    %501 = vector.shape_cast %500 : vector<8xf32> to vector<8x1xf32>
    %c0_114 = arith.constant 0 : index
    %c0_115 = arith.constant 0 : index
    %502 = vector.load %arg8[%c0_114, %c0_115] : memref<1x1xf32, #tpu.memory_space<vmem>>, vector<1x1xf32>
    %503 = vector.broadcast %502 : vector<1x1xf32> to vector<8x1xf32>
    %504 = arith.addf %501, %503 : vector<8x1xf32>
    %505 = arith.negf %504 : vector<8x1xf32>
    %506 = math.exp %505 : vector<8x1xf32>
    %cst_116 = arith.constant 1.000000e+00 : f32
    %507 = vector.broadcast %cst_116 : f32 to vector<8x1xf32>
    %508 = arith.addf %507, %506 : vector<8x1xf32>
    %509 = arith.divf %507, %508 : vector<8x1xf32>
    %510 = tpu.transpose %509, [1, 0] : vector<8x1xf32> -> vector<1x8xf32>
    %c0_117 = arith.constant 0 : index
    %c0_118 = arith.constant 0 : index
    %511 = vector.load %arg9[%c0_117, %c0_118] : memref<1x8xf32, #tpu.memory_space<vmem>>, vector<1x8xf32>
    tpu.vector_store %arg9[%c0_117, %c0_118], %510 {strides = array<i32>} : memref<1x8xf32, #tpu.memory_space<vmem>>, vector<1x8xf32>,
    return
  }
  func.func @transform_0(%arg0: i32) -> (i32, i32) {
    %c0_i32 = arith.constant 0 : i32
    %c0_i32_0 = arith.constant 0 : i32
    return %c0_i32, %arg0 : i32, i32
  }
  func.func @transform_1(%arg0: i32) -> (i32, i32) {
    %c0_i32 = arith.constant 0 : i32
    %c0_i32_0 = arith.constant 0 : i32
    %c0_i32_1 = arith.constant 0 : i32
    return %c0_i32, %c0_i32_0 : i32, i32
  }
  func.func @transform_2(%arg0: i32) -> (i32, i32) {
    %c0_i32 = arith.constant 0 : i32
    %c0_i32_0 = arith.constant 0 : i32
    %c0_i32_1 = arith.constant 0 : i32
    return %c0_i32, %c0_i32_0 : i32, i32
  }
  func.func @transform_3(%arg0: i32) -> (i32, i32) {
    %c0_i32 = arith.constant 0 : i32
    %c0_i32_0 = arith.constant 0 : i32
    %c0_i32_1 = arith.constant 0 : i32
    return %c0_i32, %c0_i32_0 : i32, i32
  }
  func.func @transform_4(%arg0: i32) -> (i32, i32) {
    %c0_i32 = arith.constant 0 : i32
    %c0_i32_0 = arith.constant 0 : i32
    %c0_i32_1 = arith.constant 0 : i32
    return %c0_i32, %c0_i32_0 : i32, i32
  }
  func.func @transform_5(%arg0: i32) -> (i32, i32) {
    %c0_i32 = arith.constant 0 : i32
    %c0_i32_0 = arith.constant 0 : i32
    %c0_i32_1 = arith.constant 0 : i32
    return %c0_i32, %c0_i32_0 : i32, i32
  }
  func.func @transform_6(%arg0: i32) -> (i32, i32) {
    %c0_i32 = arith.constant 0 : i32
    %c0_i32_0 = arith.constant 0 : i32
    %c0_i32_1 = arith.constant 0 : i32
    return %c0_i32, %c0_i32_0 : i32, i32
  }
  func.func @transform_7(%arg0: i32) -> (i32, i32) {
    %c0_i32 = arith.constant 0 : i32
    %c0_i32_0 = arith.constant 0 : i32
    %c0_i32_1 = arith.constant 0 : i32
    return %c0_i32, %c0_i32_0 : i32, i32
  }
  func.func @transform_8(%arg0: i32) -> (i32, i32) {
    %c0_i32 = arith.constant 0 : i32
    %c0_i32_0 = arith.constant 0 : i32
    return %c0_i32, %arg0 : i32, i32
  }
}

</mosaic_0001>

<bundles_post_ra>
// kernel: tpu_custom_call.1
= control target key start
LH: loop header
LB: loop body
LE: loop exit
PB: predicated region body
PF: predicated region fallthrough
CT: control target
= control target key end

     0   :  { %s2363_s0 = inlined_call_operand.vmem [shape: f32[16,8], index: 0, kind: input, shape index: {}]   ;;  %s2364_s1 = inlined_call_operand.vmem [shape: f32[1,128], index: 1, kind: input, shape index: {}]   ;;  %s2365_s2 = inlined_call_operand.hbm [shape: f32[32,128], index: 2, kind: input, shape index: {}]   ;;  %s2366_s3 = inlined_call_operand.hbm [shape: f32[1,128], index: 3, kind: input, shape index: {}]   ;;  %s2367_s4 = inlined_call_operand.vmem [shape: f32[32,32], index: 4, kind: input, shape index: {}]   ;;  %s2368_s5 = inlined_call_operand.vmem [shape: f32[1,32], index: 5, kind: input, shape index: {}]   ;;  %s2369_s6 = inlined_call_operand.vmem [shape: f32[1,32], index: 6, kind: input, shape index: {}]   ;;  %s2370_s7 = inlined_call_operand.<no memory space> [shape: f32[1,1], index: 7, kind: input, shape index: {}]   ;;  %s2371_s8 = inlined_call_operand.hbm [shape: f32[1,8], index: 8, kind: output, shape index: {}]  }
   0x1   :  { %v13_v0 = vstv %s2370_s7 }
   0x2   :  { %14 = vst [vmem:[#allocation3] sm:$0x1] %v13_v0 }
   0x3   :  { %15 = vsyncpa [#allocation5], 0 }
   0x4   :  { %16 = vsyncpa [#allocation8], 0 }
   0x5   :  { %17 = vsyncpa [#allocation6], 0  ;;  %s2008_s29 = smov [#allocation4]  }
   0x6   :  { %s27_s30 = sshll.u32 %s2008_s29, 4  ;;  %s28_s30 = int_to_ptr.vmem [resolvable:$true] %s27_s30 }
   0x7   :  { %s1950_s9 = scalar_lea.vmem %s28_s30, 512  ;;  %p1955_p1 = scmp.lt.s32.totalorder %s28_s30, %s28_s30 }
   0x8   :  { %p1951_p0 = scmp.ne.s32.totalorder %s28_s30, %s1950_s9  ;;  %p1956_p2 = scmp.lt.s32.totalorder %s1950_s9, %s1950_s9 }
   0xa   :  { %p1957_p3 = por %p1956_p2, %p1955_p1 }
   0xc   :  { %p1958_p4 = pnand %p1957_p3, %p1951_p0 }
   0xe   :  { %1961 = shalt.err (!%p1958_p4)
}
   0xf   :  { %s2009_s10 = smov 128   ;;  %s2010_s11 = smov 8  }
  0x10   :  { %33 = dma.hbm_to_vmem [thread:$0]  %s2365_s2, 512, %s28_s30, [#allocation5], %s2009_s10, %s2009_s10, %s2010_s11  }
  0x11   :  { %s2011_s7 = smov [#allocation7]  }
  0x12   :  { %s40_s14 = sshll.u32 %s2011_s7, 4  ;;  %s41_s14 = int_to_ptr.vmem [resolvable:$true] %s40_s14 }
  0x13   :  { %s1970_s15 = scalar_lea.vmem %s41_s14, 16  ;;  %s1974_s16 = scalar_lea.vmem %s41_s14, 32 }
  0x14   :  { %p1971_p5 = scmp.ne.s32.totalorder %s41_s14, %s1970_s15  ;;  %p1975_p6 = scmp.lt.s32.totalorder %s41_s14, %s41_s14 }
  0x15   :  { %p1976_p7 = scmp.lt.s32.totalorder %s1974_s16, %s1970_s15 }
  0x17   :  { %p1977_p8 = por %p1976_p7, %p1975_p6 }
  0x19   :  { %p1978_p9 = pnand %p1977_p8, %p1971_p5 }
  0x1b   :  { %1981 = shalt.err (!%p1978_p9)
}
  0x1c   :  { %43 = dma.hbm_to_vmem [thread:$0]  %s2366_s3, 16, %s41_s14, [#allocation8]  }
  0x1d   :  { %2002 = dma.done.wait [#allocation5], 512  }
  0x1e   :  { %2003 = vsyncadd [#allocation5], 4294966784 }
  0x1f   :  { %2004 = dma.done.wait [#allocation8], 16  }
  0x20   :  { %2005 = vsyncadd [#allocation8], 4294967280  ;;  %v2012_v1 = vmov 0.0   ;;  %vm2013_vm0 = vmmov 0   ;;  %v2014_v2 = vmov 0   ;;  %v67_v3 = vld [vmem:[%s2363_s0] sm:$0xff] }
  0x21   :  { %1631 = vmatprep.subr.bf16.mxu0 %v2012_v1  ;;  %1635 = vmatprep.mubr.msk.bf16.mxu0 %vm2013_vm0, %v2012_v1  ;;  %v63_v4 = vld [vmem:[#allocation4 + $0x10] sm:$0xff]  ;;  %v64_v5 = vld [vmem:[#allocation4 + $0x18] sm:$0xff]  ;;  %v61_v6 = vld [vmem:[#allocation4] sm:$0xff]  ;;  %s2015_s22 = smov 64   ;;  %s2016_s23 = smov 32   ;;  %v2017_v32 = vmov 1  }
  0x22   :  { %1792 = vset.pattern.permute.xlu1 %v2014_v2  ;;  %1639 = vmatprep.subr.bf16.mxu1 %v2012_v1  ;;  %v62_v7 = vld [vmem:[#allocation4 + $0x8] sm:$0xff]  ;;  %v2099_v9 = vpack.c.bf16 %v64_v5, %v63_v4  ;;  %v2123_v16 = vld [vmem:[%s2364_s1] ss:$0 sm:$0xff]  ;;  %v2125_v18 = vld [vmem:[#allocation7] ss:$0 sm:$0xff]  ;;  %vm242_vm1 = vcmask 261120  }
  0x23   :  { %1643 = vmatprep.mubr.msk.bf16.mxu1 %vm2013_vm0, %v2012_v1  ;;  %69 = vxpose.xlu0.b32.start [1/2] (short) (narrow) %v67_v3, 8  ;;  %v68_v8 = vld [vmem:[%s2363_s0 + $0x8] sm:$0xff]  ;;  %v2102_v10 = vpack.c.bf16 %v62_v7, %v61_v6  ;;  %v2018_v56 = vmov 2   ;;  %vm1524_vm2 = vcmask 57344  }
  0x24   :  { %1632 = vmatpush3.bf16.msra.mxu0 %v2099_v9  ;;  %1640 = vmatpush3.bf16.msra.mxu1 %v2099_v9 }
  0x25   :  { %1633 = vmatprep.subr.bf16.mxu0 %v2012_v1  ;;  %1641 = vmatprep.subr.bf16.mxu1 %v2012_v1 }
  0x27   :  { %70 = vxpose.xlu0.b32.end [2/2] (short) (narrow) %v68_v8, 8 }
  0x28   :  { %1634 = vmatpush3.bf16.msra.mxu0 %v2102_v10  ;;  %1642 = vmatpush3.bf16.msra.mxu1 %v2102_v10 }
  0x29   :  { %1647 = vmatprep.subr.bf16.mxu0 %v2012_v1  ;;  %1655 = vmatprep.subr.bf16.mxu1 %v2012_v1 }
  0x2b   :  { %1636 = vmatmul.mubr.bf16.vlgmr.msra.gmra.mxu0 %v2014_v2 }
  0x2c   :  { %1648 = vmatpush3.bf16.msra.mxu0 %v2099_v9  ;;  %1651 = vmatprep.mubr.msk.bf16.mxu0 %vm2013_vm0, %v2012_v1 }
  0x2d   :  { %1649 = vmatprep.subr.bf16.mxu0 %v2012_v1 }
  0x30   :  { %1650 = vmatpush3.bf16.msra.mxu0 %v2102_v10 }
  0x31   :  { %1663 = vmatprep.subr.bf16.mxu0 %v2012_v1 }
  0x9f   :  { %v2117_v11 = vpop.trf.xlu0 }
  0xa0   :  { %103 = vperm.xlu1 %1792, %v2117_v11  }
  0xa4   :  { %1793 = vset.pattern.permute.xlu1 %v2017_v32 }
  0xeb   :  { %v280_v12 = vpop.f32.mrf.mxu0 }
  0xed   :  { %v1637_v13 = vpop.f32.mrf.mxu0 }
  0xef   :  { %v283_v14 = vpop.f32.mrf.mxu0 }
  0xf1   :  { %v1638_v15 = vpop.f32.mrf.mxu0 }
 0x11b   :  { %v104_v17 = vpop.permute.xlu1 %103 }
 0x11c   :  { %v112_v19 = vmul.f32 %v2123_v16, %v104_v17 }
 0x11e   :  { %v119_v20 = vadd.f32 %v2125_v18, %v112_v19  ;;  %v2019_v19 = vmov 3  }
 0x120   :  { %v286_v21 = vadd.f32 %v280_v12, %v119_v20 }
 0x122   :  { %1808 = vtanh.f32 %v286_v21  ;;  %v1544_v23 = vmul.f32 -1.442695, %v286_v21 }
 0x124   :  { %1810 = vpow2.f32 %v1544_v23 }
 0x12f   :  { %v1809_v22 = vpop.eup %1808 }
 0x130   :  { %296 = vrot.lane.b32.xlu1 %v1809_v22, %s2015_s22 }
 0x131   :  { %v1811_v24 = vpop.eup %1810 }
 0x132   :  { %v290_v25 = vadd.f32 1.0, %v1811_v24 }
 0x134   :  { %1812 = vrcp.f32 %v290_v25 }
 0x141   :  { %v1813_v26 = vpop.eup %1812 }
 0x142   :  { %v294_v29 = vmul.f32 0.0, %v1813_v26 }
 0x1a2   :  { %v297_v27 = vpop.permute.xlu1 %296 }
 0x1a3   :  { %v299_v28 = vmul.f32 %v1813_v26, %v297_v27 }
 0x1a5   :  { %301 = vrot.lane.b32.xlu0 %v299_v28, %s2016_s23 }
 0x217   :  { %v302_v30 = vpop.permute.xlu0 %301 }
 0x218   :  { %v304_v31 = vadd.f32 %v302_v30, %v294_v29 }
 0x21a   :  { %1814 = vtanh.f32 %v304_v31 }
 0x227   :  { %v1815_v33 = vpop.eup %1814 }
 0x228   :  { %307 = vrot.lane.b32.xlu1 %v1815_v33, %s2015_s22 }
 0x29a   :  { %v308_v34 = vpop.permute.xlu1 %307 }
 0x29b   :  { %v310_v35 = vmul.f32 %v1813_v26, %v308_v34 }
 0x29d   :  { %v311_v36 = vpack.c.bf16 %v310_v35, %v310_v35 }
 0x29f   :  { %314 = vrot.lane.b32.xlu1 %v311_v36, %s2016_s23 }
 0x2a3   :  { %122 = vperm.xlu1 %1793, %v2117_v11  }
 0x2a7   :  { %1794 = vset.pattern.permute.xlu1 %v2018_v56 }
 0x311   :  { %v315_v37 = vpop.permute.xlu1 %314 }
 0x312   :  { %1644 = vmatmul.mubr.msk.bf16.vlgmr.msra.gmra.mxu1 %vm242_vm1, %v315_v37 }
 0x313   :  { %1656 = vmatpush3.bf16.msra.mxu1 %v2099_v9  ;;  %1659 = vmatprep.mubr.msk.bf16.mxu1 %vm2013_vm0, %v2012_v1 }
 0x314   :  { %1657 = vmatprep.subr.bf16.mxu1 %v2012_v1 }
 0x317   :  { %1658 = vmatpush3.bf16.msra.mxu1 %v2102_v10 }
 0x318   :  { %1671 = vmatprep.subr.bf16.mxu1 %v2012_v1 }
 0x31e   :  { %v123_v38 = vpop.permute.xlu1 %122 }
 0x31f   :  { %v125_v39 = vmul.f32 %v2123_v16, %v123_v38 }
 0x321   :  { %v126_v40 = vadd.f32 %v2125_v18, %v125_v39 }
 0x3d2   :  { %v353_v41 = vpop.f32.mrf.mxu1 }
 0x3d3   :  { %v359_v42 = vadd.f32 %v353_v41, %v126_v40 }
 0x3d4   :  { %v1645_v43 = vpop.f32.mrf.mxu1 }
 0x3d5   :  { %1816 = vtanh.f32 %v359_v42  ;;  %v1546_v47 = vmul.f32 -1.442695, %v359_v42  ;;  %v2020_v43 = vmov 4  }
 0x3d6   :  { %v356_v44 = vpop.f32.mrf.mxu1  ;;  %1796 = vset.pattern.permute.xlu0 %v2020_v43 }
 0x3d7   :  { %1818 = vpow2.f32 %v1546_v47 }
 0x3d8   :  { %v1646_v45 = vpop.f32.mrf.mxu1 }
 0x3e2   :  { %v1817_v46 = vpop.eup %1816 }
 0x3e3   :  { %369 = vrot.lane.b32.xlu1 %v1817_v46, %s2015_s22 }
 0x3e4   :  { %v1819_v48 = vpop.eup %1818 }
 0x3e5   :  { %v363_v49 = vadd.f32 1.0, %v1819_v48 }
 0x3e7   :  { %1820 = vrcp.f32 %v363_v49 }
 0x3f4   :  { %v1821_v50 = vpop.eup %1820 }
 0x3f5   :  { %v367_v53 = vmul.f32 %v1821_v50, %v304_v31 }
 0x455   :  { %v370_v51 = vpop.permute.xlu1 %369 }
 0x456   :  { %v372_v52 = vmul.f32 %v1821_v50, %v370_v51 }
 0x458   :  { %374 = vrot.lane.b32.xlu1 %v372_v52, %s2016_s23 }
 0x4ca   :  { %v375_v54 = vpop.permute.xlu1 %374 }
 0x4cb   :  { %v377_v55 = vadd.f32 %v375_v54, %v367_v53 }
 0x4cd   :  { %1822 = vtanh.f32 %v377_v55 }
 0x4da   :  { %v1823_v57 = vpop.eup %1822 }
 0x4db   :  { %380 = vrot.lane.b32.xlu1 %v1823_v57, %s2015_s22 }
 0x54d   :  { %v381_v58 = vpop.permute.xlu1 %380 }
 0x54e   :  { %v383_v59 = vmul.f32 %v1821_v50, %v381_v58 }
 0x550   :  { %v384_v60 = vpack.c.bf16 %v383_v59, %v383_v59 }
 0x552   :  { %387 = vrot.lane.b32.xlu1 %v384_v60, %s2016_s23 }
 0x556   :  { %130 = vperm.xlu1 %1794, %v2117_v11  }
 0x55a   :  { %1795 = vset.pattern.permute.xlu1 %v2019_v19 }
 0x5c4   :  { %v388_v61 = vpop.permute.xlu1 %387 }
 0x5c5   :  { %1652 = vmatmul.mubr.msk.bf16.vlgmr.msra.gmra.mxu0 %vm242_vm1, %v388_v61 }
 0x5c6   :  { %1664 = vmatpush3.bf16.msra.mxu0 %v2099_v9  ;;  %1667 = vmatprep.mubr.msk.bf16.mxu0 %vm2013_vm0, %v2012_v1 }
 0x5c7   :  { %1665 = vmatprep.subr.bf16.mxu0 %v2012_v1 }
 0x5ca   :  { %1666 = vmatpush3.bf16.msra.mxu0 %v2102_v10 }
 0x5cb   :  { %1679 = vmatprep.subr.bf16.mxu0 %v2012_v1 }
 0x5d1   :  { %v131_v62 = vpop.permute.xlu1 %130 }
 0x5d2   :  { %v133_v63 = vmul.f32 %v2123_v16, %v131_v62 }
 0x5d4   :  { %v134_v0 = vadd.f32 %v2125_v18, %v133_v63 }
 0x685   :  { %v426_v2 = vpop.f32.mrf.mxu0 }
 0x686   :  { %v432_v3 = vadd.f32 %v426_v2, %v134_v0 }
 0x687   :  { %v1653_v4 = vpop.f32.mrf.mxu0 }
 0x688   :  { %1824 = vtanh.f32 %v432_v3  ;;  %v1548_v8 = vmul.f32 -1.442695, %v432_v3  ;;  %v2021_v4 = vmov 5  }
 0x689   :  { %v429_v5 = vpop.f32.mrf.mxu0 }
 0x68a   :  { %1826 = vpow2.f32 %v1548_v8 }
 0x68b   :  { %v1654_v6 = vpop.f32.mrf.mxu0 }
 0x695   :  { %v1825_v7 = vpop.eup %1824 }
 0x696   :  { %442 = vrot.lane.b32.xlu1 %v1825_v7, %s2015_s22 }
 0x697   :  { %v1827_v12 = vpop.eup %1826 }
 0x698   :  { %v436_v13 = vadd.f32 1.0, %v1827_v12 }
 0x69a   :  { %1828 = vrcp.f32 %v436_v13 }
 0x6a7   :  { %v1829_v14 = vpop.eup %1828 }
 0x6a8   :  { %v440_v20 = vmul.f32 %v1829_v14, %v377_v55 }
 0x708   :  { %v443_v15 = vpop.permute.xlu1 %442 }
 0x709   :  { %v445_v17 = vmul.f32 %v1829_v14, %v443_v15 }
 0x70b   :  { %447 = vrot.lane.b32.xlu1 %v445_v17, %s2016_s23 }
 0x77d   :  { %v448_v21 = vpop.permute.xlu1 %447 }
 0x77e   :  { %v450_v22 = vadd.f32 %v448_v21, %v440_v20 }
 0x780   :  { %1830 = vtanh.f32 %v450_v22 }
 0x78d   :  { %v1831_v23 = vpop.eup %1830 }
 0x78e   :  { %453 = vrot.lane.b32.xlu1 %v1831_v23, %s2015_s22 }
 0x792   :  { %138 = vperm.xlu1 %1795, %v2117_v11  }
 0x800   :  { %v454_v24 = vpop.permute.xlu1 %453 }
 0x801   :  { %v456_v25 = vmul.f32 %v1829_v14, %v454_v24 }
 0x803   :  { %v457_v26 = vpack.c.bf16 %v456_v25, %v456_v25 }
 0x805   :  { %460 = vrot.lane.b32.xlu0 %v457_v26, %s2016_s23 }
 0x80d   :  { %v139_v28 = vpop.permute.xlu1 %138 }
 0x80e   :  { %v141_v29 = vmul.f32 %v2123_v16, %v139_v28 }
 0x810   :  { %v142_v30 = vadd.f32 %v2125_v18, %v141_v29 }
 0x877   :  { %v461_v27 = vpop.permute.xlu0 %460 }
 0x878   :  { %1660 = vmatmul.mubr.msk.bf16.vlgmr.msra.gmra.mxu1 %vm242_vm1, %v461_v27 }
 0x879   :  { %1672 = vmatpush3.bf16.msra.mxu1 %v2099_v9  ;;  %1675 = vmatprep.mubr.msk.bf16.mxu1 %vm2013_vm0, %v2012_v1 }
 0x87a   :  { %1673 = vmatprep.subr.bf16.mxu1 %v2012_v1 }
 0x87d   :  { %1674 = vmatpush3.bf16.msra.mxu1 %v2102_v10 }
 0x87e   :  { %1687 = vmatprep.subr.bf16.mxu1 %v2012_v1 }
 0x938   :  { %v499_v31 = vpop.f32.mrf.mxu1 }
 0x939   :  { %v505_v32 = vadd.f32 %v499_v31, %v142_v30 }
 0x93a   :  { %v1661_v33 = vpop.f32.mrf.mxu1 }
 0x93b   :  { %1832 = vtanh.f32 %v505_v32  ;;  %v1550_v37 = vmul.f32 -1.442695, %v505_v32  ;;  %v2022_v33 = vmov 6  }
 0x93c   :  { %v502_v34 = vpop.f32.mrf.mxu1 }
 0x93d   :  { %1834 = vpow2.f32 %v1550_v37 }
 0x93e   :  { %v1662_v35 = vpop.f32.mrf.mxu1 }
 0x948   :  { %v1833_v36 = vpop.eup %1832 }
 0x949   :  { %515 = vrot.lane.b32.xlu0 %v1833_v36, %s2015_s22 }
 0x94a   :  { %v1835_v38 = vpop.eup %1834 }
 0x94b   :  { %v509_v39 = vadd.f32 1.0, %v1835_v38 }
 0x94d   :  { %1836 = vrcp.f32 %v509_v39 }
 0x95a   :  { %v1837_v40 = vpop.eup %1836 }
 0x95b   :  { %v513_v44 = vmul.f32 %v1837_v40, %v450_v22 }
 0x9bb   :  { %v516_v41 = vpop.permute.xlu0 %515 }
 0x9bc   :  { %v518_v42 = vmul.f32 %v1837_v40, %v516_v41 }
 0x9be   :  { %520 = vrot.lane.b32.xlu1 %v518_v42, %s2016_s23 }
 0xa30   :  { %v521_v45 = vpop.permute.xlu1 %520 }
 0xa31   :  { %v523_v46 = vadd.f32 %v521_v45, %v513_v44 }
 0xa33   :  { %1838 = vtanh.f32 %v523_v46 }
 0xa40   :  { %v1839_v47 = vpop.eup %1838 }
 0xa41   :  { %526 = vrot.lane.b32.xlu0 %v1839_v47, %s2015_s22 }
 0xa45   :  { %146 = vperm.xlu0 %1796, %v2117_v11  }
 0xa49   :  { %1797 = vset.pattern.permute.xlu0 %v2021_v4 }
 0xab3   :  { %v527_v48 = vpop.permute.xlu0 %526 }
 0xab4   :  { %v529_v49 = vmul.f32 %v1837_v40, %v527_v48 }
 0xab6   :  { %v530_v50 = vpack.c.bf16 %v529_v49, %v529_v49 }
 0xab8   :  { %533 = vrot.lane.b32.xlu1 %v530_v50, %s2016_s23 }
 0xac0   :  { %v147_v52 = vpop.permute.xlu0 %146 }
 0xac1   :  { %v149_v53 = vmul.f32 %v2123_v16, %v147_v52 }
 0xac3   :  { %v150_v54 = vadd.f32 %v2125_v18, %v149_v53 }
 0xb2a   :  { %v534_v51 = vpop.permute.xlu1 %533 }
 0xb2b   :  { %1668 = vmatmul.mubr.msk.bf16.vlgmr.msra.gmra.mxu0 %vm242_vm1, %v534_v51 }
 0xb2c   :  { %1680 = vmatpush3.bf16.msra.mxu0 %v2099_v9  ;;  %1683 = vmatprep.mubr.msk.bf16.mxu0 %vm2013_vm0, %v2012_v1 }
 0xb2d   :  { %1681 = vmatprep.subr.bf16.mxu0 %v2012_v1 }
 0xb30   :  { %1682 = vmatpush3.bf16.msra.mxu0 %v2102_v10 }
 0xb31   :  { %1695 = vmatprep.subr.bf16.mxu0 %v2012_v1 }
 0xbeb   :  { %v572_v55 = vpop.f32.mrf.mxu0 }
 0xbec   :  { %v578_v56 = vadd.f32 %v572_v55, %v150_v54 }
 0xbed   :  { %v1669_v57 = vpop.f32.mrf.mxu0 }
 0xbee   :  { %1840 = vtanh.f32 %v578_v56  ;;  %v1552_v61 = vmul.f32 -1.442695, %v578_v56  ;;  %v2023_v57 = vmov 7  }
 0xbef   :  { %v575_v58 = vpop.f32.mrf.mxu0 }
 0xbf0   :  { %1842 = vpow2.f32 %v1552_v61 }
 0xbf1   :  { %v1670_v59 = vpop.f32.mrf.mxu0 }
 0xbfb   :  { %v1841_v60 = vpop.eup %1840 }
 0xbfc   :  { %588 = vrot.lane.b32.xlu1 %v1841_v60, %s2015_s22 }
 0xbfd   :  { %v1843_v62 = vpop.eup %1842 }
 0xbfe   :  { %v582_v63 = vadd.f32 1.0, %v1843_v62 }
 0xc00   :  { %1844 = vrcp.f32 %v582_v63 }
 0xc0d   :  { %v1845_v0 = vpop.eup %1844 }
 0xc0e   :  { %v586_v5 = vmul.f32 %v1845_v0, %v523_v46 }
 0xc6e   :  { %v589_v2 = vpop.permute.xlu1 %588 }
 0xc6f   :  { %v591_v3 = vmul.f32 %v1845_v0, %v589_v2 }
 0xc71   :  { %593 = vrot.lane.b32.xlu1 %v591_v3, %s2016_s23 }
 0xce3   :  { %v594_v6 = vpop.permute.xlu1 %593 }
 0xce4   :  { %v596_v7 = vadd.f32 %v594_v6, %v586_v5 }
 0xce6   :  { %1846 = vtanh.f32 %v596_v7 }
 0xcf3   :  { %v1847_v8 = vpop.eup %1846 }
 0xcf4   :  { %599 = vrot.lane.b32.xlu0 %v1847_v8, %s2015_s22 }
 0xcf8   :  { %154 = vperm.xlu0 %1797, %v2117_v11  }
 0xcfc   :  { %1798 = vset.pattern.permute.xlu0 %v2022_v33 }
 0xd66   :  { %v600_v12 = vpop.permute.xlu0 %599 }
 0xd67   :  { %v602_v13 = vmul.f32 %v1845_v0, %v600_v12 }
 0xd69   :  { %v603_v14 = vpack.c.bf16 %v602_v13, %v602_v13 }
 0xd6b   :  { %606 = vrot.lane.b32.xlu1 %v603_v14, %s2016_s23 }
 0xd73   :  { %v155_v17 = vpop.permute.xlu0 %154 }
 0xd74   :  { %v157_v19 = vmul.f32 %v2123_v16, %v155_v17 }
 0xd76   :  { %v158_v20 = vadd.f32 %v2125_v18, %v157_v19 }
 0xddd   :  { %v607_v15 = vpop.permute.xlu1 %606 }
 0xdde   :  { %1676 = vmatmul.mubr.msk.bf16.vlgmr.msra.gmra.mxu1 %vm242_vm1, %v607_v15 }
 0xddf   :  { %1688 = vmatpush3.bf16.msra.mxu1 %v2099_v9  ;;  %1691 = vmatprep.mubr.msk.bf16.mxu1 %vm2013_vm0, %v2012_v1 }
 0xde0   :  { %1689 = vmatprep.subr.bf16.mxu1 %v2012_v1 }
 0xde3   :  { %1690 = vmatpush3.bf16.msra.mxu1 %v2102_v10 }
 0xde4   :  { %1703 = vmatprep.subr.bf16.mxu1 %v2012_v1 }
 0xe9e   :  { %v645_v21 = vpop.f32.mrf.mxu1 }
 0xe9f   :  { %v651_v22 = vadd.f32 %v645_v21, %v158_v20 }
 0xea0   :  { %v1677_v23 = vpop.f32.mrf.mxu1 }
 0xea1   :  { %1848 = vtanh.f32 %v651_v22  ;;  %v1554_v27 = vmul.f32 -1.442695, %v651_v22  ;;  %v2024_v23 = vmov 8  }
 0xea2   :  { %v648_v24 = vpop.f32.mrf.mxu1 }
 0xea3   :  { %1850 = vpow2.f32 %v1554_v27 }
 0xea4   :  { %v1678_v25 = vpop.f32.mrf.mxu1 }
 0xeae   :  { %v1849_v26 = vpop.eup %1848 }
 0xeaf   :  { %661 = vrot.lane.b32.xlu1 %v1849_v26, %s2015_s22 }
 0xeb0   :  { %v1851_v28 = vpop.eup %1850 }
 0xeb1   :  { %v655_v29 = vadd.f32 1.0, %v1851_v28 }
 0xeb3   :  { %1852 = vrcp.f32 %v655_v29 }
 0xec0   :  { %v1853_v30 = vpop.eup %1852 }
 0xec1   :  { %v659_v34 = vmul.f32 %v1853_v30, %v596_v7 }
 0xf21   :  { %v662_v31 = vpop.permute.xlu1 %661 }
 0xf22   :  { %v664_v32 = vmul.f32 %v1853_v30, %v662_v31 }
 0xf24   :  { %666 = vrot.lane.b32.xlu1 %v664_v32, %s2016_s23 }
 0xf96   :  { %v667_v35 = vpop.permute.xlu1 %666 }
 0xf97   :  { %v669_v36 = vadd.f32 %v667_v35, %v659_v34 }
 0xf99   :  { %1854 = vtanh.f32 %v669_v36 }
 0xfa6   :  { %v1855_v37 = vpop.eup %1854 }
 0xfa7   :  { %672 = vrot.lane.b32.xlu0 %v1855_v37, %s2015_s22 }
 0xfab   :  { %162 = vperm.xlu0 %1798, %v2117_v11  }
 0xfaf   :  { %1799 = vset.pattern.permute.xlu0 %v2023_v57 }
0x1019   :  { %v673_v38 = vpop.permute.xlu0 %672 }
0x101a   :  { %v675_v39 = vmul.f32 %v1853_v30, %v673_v38 }
0x101c   :  { %v676_v40 = vpack.c.bf16 %v675_v39, %v675_v39 }
0x101e   :  { %679 = vrot.lane.b32.xlu1 %v676_v40, %s2016_s23 }
0x1026   :  { %v163_v42 = vpop.permute.xlu0 %162 }
0x1027   :  { %v165_v43 = vmul.f32 %v2123_v16, %v163_v42 }
0x1029   :  { %v166_v44 = vadd.f32 %v2125_v18, %v165_v43 }
0x1090   :  { %v680_v41 = vpop.permute.xlu1 %679 }
0x1091   :  { %1684 = vmatmul.mubr.msk.bf16.vlgmr.msra.gmra.mxu0 %vm242_vm1, %v680_v41 }
0x1092   :  { %1696 = vmatpush3.bf16.msra.mxu0 %v2099_v9  ;;  %1699 = vmatprep.mubr.msk.bf16.mxu0 %vm2013_vm0, %v2012_v1 }
0x1093   :  { %1697 = vmatprep.subr.bf16.mxu0 %v2012_v1 }
0x1096   :  { %1698 = vmatpush3.bf16.msra.mxu0 %v2102_v10 }
0x1097   :  { %1711 = vmatprep.subr.bf16.mxu0 %v2012_v1 }
0x1151   :  { %v718_v45 = vpop.f32.mrf.mxu0 }
0x1152   :  { %v724_v46 = vadd.f32 %v718_v45, %v166_v44 }
0x1153   :  { %v1685_v47 = vpop.f32.mrf.mxu0 }
0x1154   :  { %1856 = vtanh.f32 %v724_v46  ;;  %v1556_v51 = vmul.f32 -1.442695, %v724_v46  ;;  %v2025_v47 = vmov 9  }
0x1155   :  { %v721_v48 = vpop.f32.mrf.mxu0 }
0x1156   :  { %1858 = vpow2.f32 %v1556_v51 }
0x1157   :  { %v1686_v49 = vpop.f32.mrf.mxu0 }
0x1161   :  { %v1857_v50 = vpop.eup %1856 }
0x1162   :  { %734 = vrot.lane.b32.xlu1 %v1857_v50, %s2015_s22 }
0x1163   :  { %v1859_v52 = vpop.eup %1858 }
0x1164   :  { %v728_v53 = vadd.f32 1.0, %v1859_v52 }
0x1166   :  { %1860 = vrcp.f32 %v728_v53 }
0x1173   :  { %v1861_v54 = vpop.eup %1860 }
0x1174   :  { %v732_v58 = vmul.f32 %v1861_v54, %v669_v36 }
0x11d4   :  { %v735_v55 = vpop.permute.xlu1 %734 }
0x11d5   :  { %v737_v56 = vmul.f32 %v1861_v54, %v735_v55 }
0x11d7   :  { %739 = vrot.lane.b32.xlu1 %v737_v56, %s2016_s23 }
0x1249   :  { %v740_v59 = vpop.permute.xlu1 %739 }
0x124a   :  { %v742_v60 = vadd.f32 %v740_v59, %v732_v58 }
0x124c   :  { %1862 = vtanh.f32 %v742_v60 }
0x1259   :  { %v1863_v61 = vpop.eup %1862 }
0x125a   :  { %745 = vrot.lane.b32.xlu0 %v1863_v61, %s2015_s22 }
0x125e   :  { %170 = vperm.xlu0 %1799, %v2117_v11  }
0x1262   :  { %1800 = vset.pattern.permute.xlu0 %v2024_v23 }
0x12cc   :  { %v746_v62 = vpop.permute.xlu0 %745 }
0x12cd   :  { %v748_v63 = vmul.f32 %v1861_v54, %v746_v62 }
0x12cf   :  { %v749_v0 = vpack.c.bf16 %v748_v63, %v748_v63 }
0x12d1   :  { %752 = vrot.lane.b32.xlu1 %v749_v0, %s2016_s23 }
0x12d9   :  { %v171_v3 = vpop.permute.xlu0 %170 }
0x12da   :  { %v173_v4 = vmul.f32 %v2123_v16, %v171_v3 }
0x12dc   :  { %v174_v5 = vadd.f32 %v2125_v18, %v173_v4 }
0x1343   :  { %v753_v2 = vpop.permute.xlu1 %752 }
0x1344   :  { %1692 = vmatmul.mubr.msk.bf16.vlgmr.msra.gmra.mxu1 %vm242_vm1, %v753_v2 }
0x1345   :  { %1704 = vmatpush3.bf16.msra.mxu1 %v2099_v9  ;;  %1707 = vmatprep.mubr.msk.bf16.mxu1 %vm2013_vm0, %v2012_v1 }
0x1346   :  { %1705 = vmatprep.subr.bf16.mxu1 %v2012_v1 }
0x1349   :  { %1706 = vmatpush3.bf16.msra.mxu1 %v2102_v10 }
0x134a   :  { %1719 = vmatprep.subr.bf16.mxu1 %v2012_v1 }
0x1404   :  { %v791_v6 = vpop.f32.mrf.mxu1 }
0x1405   :  { %v797_v7 = vadd.f32 %v791_v6, %v174_v5 }
0x1406   :  { %v1693_v8 = vpop.f32.mrf.mxu1 }
0x1407   :  { %1864 = vtanh.f32 %v797_v7  ;;  %v1558_v15 = vmul.f32 -1.442695, %v797_v7  ;;  %v2026_v8 = vmov 10  }
0x1408   :  { %v794_v12 = vpop.f32.mrf.mxu1 }
0x1409   :  { %1866 = vpow2.f32 %v1558_v15 }
0x140a   :  { %v1694_v13 = vpop.f32.mrf.mxu1 }
0x1414   :  { %v1865_v14 = vpop.eup %1864 }
0x1415   :  { %807 = vrot.lane.b32.xlu1 %v1865_v14, %s2015_s22 }
0x1416   :  { %v1867_v17 = vpop.eup %1866 }
0x1417   :  { %v801_v19 = vadd.f32 1.0, %v1867_v17 }
0x1419   :  { %1868 = vrcp.f32 %v801_v19 }
0x1426   :  { %v1869_v20 = vpop.eup %1868 }
0x1427   :  { %v805_v24 = vmul.f32 %v1869_v20, %v742_v60 }
0x1487   :  { %v808_v21 = vpop.permute.xlu1 %807 }
0x1488   :  { %v810_v22 = vmul.f32 %v1869_v20, %v808_v21 }
0x148a   :  { %812 = vrot.lane.b32.xlu1 %v810_v22, %s2016_s23 }
0x14fc   :  { %v813_v25 = vpop.permute.xlu1 %812 }
0x14fd   :  { %v815_v26 = vadd.f32 %v813_v25, %v805_v24 }
0x14ff   :  { %1870 = vtanh.f32 %v815_v26 }
0x150c   :  { %v1871_v27 = vpop.eup %1870 }
0x150d   :  { %818 = vrot.lane.b32.xlu0 %v1871_v27, %s2015_s22 }
0x1511   :  { %178 = vperm.xlu0 %1800, %v2117_v11  }
0x1515   :  { %1801 = vset.pattern.permute.xlu0 %v2025_v47 }
0x157f   :  { %v819_v28 = vpop.permute.xlu0 %818 }
0x1580   :  { %v821_v29 = vmul.f32 %v1869_v20, %v819_v28 }
0x1582   :  { %v822_v30 = vpack.c.bf16 %v821_v29, %v821_v29 }
0x1584   :  { %825 = vrot.lane.b32.xlu1 %v822_v30, %s2016_s23 }
0x158c   :  { %v179_v32 = vpop.permute.xlu0 %178 }
0x158d   :  { %v181_v33 = vmul.f32 %v2123_v16, %v179_v32 }
0x158f   :  { %v182_v34 = vadd.f32 %v2125_v18, %v181_v33 }
0x15f6   :  { %v826_v31 = vpop.permute.xlu1 %825 }
0x15f7   :  { %1700 = vmatmul.mubr.msk.bf16.vlgmr.msra.gmra.mxu0 %vm242_vm1, %v826_v31 }
0x15f8   :  { %1712 = vmatpush3.bf16.msra.mxu0 %v2099_v9  ;;  %1715 = vmatprep.mubr.msk.bf16.mxu0 %vm2013_vm0, %v2012_v1 }
0x15f9   :  { %1713 = vmatprep.subr.bf16.mxu0 %v2012_v1 }
0x15fc   :  { %1714 = vmatpush3.bf16.msra.mxu0 %v2102_v10 }
0x15fd   :  { %1727 = vmatprep.subr.bf16.mxu0 %v2012_v1 }
0x16b7   :  { %v864_v35 = vpop.f32.mrf.mxu0 }
0x16b8   :  { %v870_v36 = vadd.f32 %v864_v35, %v182_v34 }
0x16b9   :  { %v1701_v37 = vpop.f32.mrf.mxu0 }
0x16ba   :  { %1872 = vtanh.f32 %v870_v36  ;;  %v1560_v41 = vmul.f32 -1.442695, %v870_v36  ;;  %v2027_v37 = vmov 11  }
0x16bb   :  { %v867_v38 = vpop.f32.mrf.mxu0 }
0x16bc   :  { %1874 = vpow2.f32 %v1560_v41 }
0x16bd   :  { %v1702_v39 = vpop.f32.mrf.mxu0 }
0x16c7   :  { %v1873_v40 = vpop.eup %1872 }
0x16c8   :  { %880 = vrot.lane.b32.xlu1 %v1873_v40, %s2015_s22 }
0x16c9   :  { %v1875_v42 = vpop.eup %1874 }
0x16ca   :  { %v874_v43 = vadd.f32 1.0, %v1875_v42 }
0x16cc   :  { %1876 = vrcp.f32 %v874_v43 }
0x16d9   :  { %v1877_v44 = vpop.eup %1876 }
0x16da   :  { %v878_v48 = vmul.f32 %v1877_v44, %v815_v26 }
0x173a   :  { %v881_v45 = vpop.permute.xlu1 %880 }
0x173b   :  { %v883_v46 = vmul.f32 %v1877_v44, %v881_v45 }
0x173d   :  { %885 = vrot.lane.b32.xlu1 %v883_v46, %s2016_s23 }
0x17af   :  { %v886_v49 = vpop.permute.xlu1 %885 }
0x17b0   :  { %v888_v50 = vadd.f32 %v886_v49, %v878_v48 }
0x17b2   :  { %1878 = vtanh.f32 %v888_v50 }
0x17bf   :  { %v1879_v51 = vpop.eup %1878 }
0x17c0   :  { %891 = vrot.lane.b32.xlu0 %v1879_v51, %s2015_s22 }
0x17c4   :  { %186 = vperm.xlu0 %1801, %v2117_v11  }
0x17c8   :  { %1802 = vset.pattern.permute.xlu0 %v2026_v8 }
0x1832   :  { %v892_v52 = vpop.permute.xlu0 %891 }
0x1833   :  { %v894_v53 = vmul.f32 %v1877_v44, %v892_v52 }
0x1835   :  { %v895_v54 = vpack.c.bf16 %v894_v53, %v894_v53 }
0x1837   :  { %898 = vrot.lane.b32.xlu1 %v895_v54, %s2016_s23 }
0x183f   :  { %v187_v56 = vpop.permute.xlu0 %186 }
0x1840   :  { %v189_v57 = vmul.f32 %v2123_v16, %v187_v56 }
0x1842   :  { %v190_v58 = vadd.f32 %v2125_v18, %v189_v57 }
0x18a9   :  { %v899_v55 = vpop.permute.xlu1 %898 }
0x18aa   :  { %1708 = vmatmul.mubr.msk.bf16.vlgmr.msra.gmra.mxu1 %vm242_vm1, %v899_v55 }
0x18ab   :  { %1720 = vmatpush3.bf16.msra.mxu1 %v2099_v9  ;;  %1723 = vmatprep.mubr.msk.bf16.mxu1 %vm2013_vm0, %v2012_v1 }
0x18ac   :  { %1721 = vmatprep.subr.bf16.mxu1 %v2012_v1 }
0x18af   :  { %1722 = vmatpush3.bf16.msra.mxu1 %v2102_v10 }
0x18b0   :  { %1735 = vmatprep.subr.bf16.mxu1 %v2012_v1 }
0x196a   :  { %v937_v59 = vpop.f32.mrf.mxu1 }
0x196b   :  { %v943_v60 = vadd.f32 %v937_v59, %v190_v58 }
0x196c   :  { %v1709_v61 = vpop.f32.mrf.mxu1 }
0x196d   :  { %1880 = vtanh.f32 %v943_v60  ;;  %v1562_v2 = vmul.f32 -1.442695, %v943_v60  ;;  %v2028_v61 = vmov 12  }
0x196e   :  { %v940_v62 = vpop.f32.mrf.mxu1 }
0x196f   :  { %1882 = vpow2.f32 %v1562_v2 }
0x1970   :  { %v1710_v63 = vpop.f32.mrf.mxu1 }
0x197a   :  { %v1881_v0 = vpop.eup %1880 }
0x197b   :  { %953 = vrot.lane.b32.xlu1 %v1881_v0, %s2015_s22 }
0x197c   :  { %v1883_v3 = vpop.eup %1882 }
0x197d   :  { %v947_v4 = vadd.f32 1.0, %v1883_v3 }
0x197f   :  { %1884 = vrcp.f32 %v947_v4 }
0x198c   :  { %v1885_v5 = vpop.eup %1884 }
0x198d   :  { %v951_v12 = vmul.f32 %v1885_v5, %v888_v50 }
0x19ed   :  { %v954_v6 = vpop.permute.xlu1 %953 }
0x19ee   :  { %v956_v7 = vmul.f32 %v1885_v5, %v954_v6 }
0x19f0   :  { %958 = vrot.lane.b32.xlu1 %v956_v7, %s2016_s23 }
0x1a62   :  { %v959_v13 = vpop.permute.xlu1 %958 }
0x1a63   :  { %v961_v14 = vadd.f32 %v959_v13, %v951_v12 }
0x1a65   :  { %1886 = vtanh.f32 %v961_v14 }
0x1a72   :  { %v1887_v15 = vpop.eup %1886 }
0x1a73   :  { %964 = vrot.lane.b32.xlu0 %v1887_v15, %s2015_s22 }
0x1a77   :  { %194 = vperm.xlu0 %1802, %v2117_v11  }
0x1a7b   :  { %1803 = vset.pattern.permute.xlu0 %v2027_v37  ;;  %v2314_v37 = vld [vmem:[#allocation7] ss:$0 sm:$0xff] }
0x1ae5   :  { %v965_v17 = vpop.permute.xlu0 %964 }
0x1ae6   :  { %v967_v19 = vmul.f32 %v1885_v5, %v965_v17 }
0x1ae8   :  { %v968_v20 = vpack.c.bf16 %v967_v19, %v967_v19 }
0x1aea   :  { %971 = vrot.lane.b32.xlu1 %v968_v20, %s2016_s23 }
0x1af2   :  { %v195_v22 = vpop.permute.xlu0 %194 }
0x1af3   :  { %v197_v23 = vmul.f32 %v2123_v16, %v195_v22 }
0x1af5   :  { %v198_v24 = vadd.f32 %v2125_v18, %v197_v23 }
0x1b5c   :  { %v972_v21 = vpop.permute.xlu1 %971 }
0x1b5d   :  { %1716 = vmatmul.mubr.msk.bf16.vlgmr.msra.gmra.mxu0 %vm242_vm1, %v972_v21 }
0x1b5e   :  { %1728 = vmatpush3.bf16.msra.mxu0 %v2099_v9  ;;  %1731 = vmatprep.mubr.msk.bf16.mxu0 %vm2013_vm0, %v2012_v1 }
0x1b5f   :  { %1729 = vmatprep.subr.bf16.mxu0 %v2012_v1 }
0x1b62   :  { %1730 = vmatpush3.bf16.msra.mxu0 %v2102_v10 }
0x1b63   :  { %1743 = vmatprep.subr.bf16.mxu0 %v2012_v1 }
0x1c1d   :  { %v1010_v25 = vpop.f32.mrf.mxu0 }
0x1c1e   :  { %v1016_v26 = vadd.f32 %v1010_v25, %v198_v24 }
0x1c1f   :  { %v1717_v27 = vpop.f32.mrf.mxu0 }
0x1c20   :  { %1888 = vtanh.f32 %v1016_v26  ;;  %v1564_v31 = vmul.f32 -1.442695, %v1016_v26 }
0x1c21   :  { %v1013_v28 = vpop.f32.mrf.mxu0 }
0x1c22   :  { %1890 = vpow2.f32 %v1564_v31 }
0x1c23   :  { %v1718_v29 = vpop.f32.mrf.mxu0 }
0x1c2d   :  { %v1889_v30 = vpop.eup %1888 }
0x1c2e   :  { %1026 = vrot.lane.b32.xlu1 %v1889_v30, %s2015_s22 }
0x1c2f   :  { %v1891_v32 = vpop.eup %1890 }
0x1c30   :  { %v1020_v33 = vadd.f32 1.0, %v1891_v32 }
0x1c32   :  { %1892 = vrcp.f32 %v1020_v33 }
0x1c3f   :  { %v1893_v34 = vpop.eup %1892 }
0x1c40   :  { %v1024_v38 = vmul.f32 %v1893_v34, %v961_v14 }
0x1ca0   :  { %v1027_v35 = vpop.permute.xlu1 %1026 }
0x1ca1   :  { %v1029_v36 = vmul.f32 %v1893_v34, %v1027_v35  ;;  %v2311_v35 = vld [vmem:[%s2364_s1] ss:$0 sm:$0xff] }
0x1ca3   :  { %1031 = vrot.lane.b32.xlu1 %v1029_v36, %s2016_s23 }
0x1d15   :  { %v1032_v39 = vpop.permute.xlu1 %1031 }
0x1d16   :  { %v1034_v40 = vadd.f32 %v1032_v39, %v1024_v38 }
0x1d18   :  { %1894 = vtanh.f32 %v1034_v40 }
0x1d25   :  { %v1895_v41 = vpop.eup %1894 }
0x1d26   :  { %1037 = vrot.lane.b32.xlu0 %v1895_v41, %s2015_s22 }
0x1d2a   :  { %202 = vperm.xlu0 %1803, %v2117_v11  }
0x1d2e   :  { %1804 = vset.pattern.permute.xlu0 %v2028_v61 }
0x1d98   :  { %v1038_v42 = vpop.permute.xlu0 %1037 }
0x1d99   :  { %v1040_v43 = vmul.f32 %v1893_v34, %v1038_v42 }
0x1d9b   :  { %v1041_v44 = vpack.c.bf16 %v1040_v43, %v1040_v43 }
0x1d9d   :  { %1044 = vrot.lane.b32.xlu1 %v1041_v44, %s2016_s23 }
0x1da5   :  { %v203_v46 = vpop.permute.xlu0 %202 }
0x1da6   :  { %v205_v47 = vmul.f32 %v2123_v16, %v203_v46 }
0x1da8   :  { %v206_v48 = vadd.f32 %v2125_v18, %v205_v47 }
0x1e0f   :  { %v1045_v45 = vpop.permute.xlu1 %1044 }
0x1e10   :  { %1724 = vmatmul.mubr.msk.bf16.vlgmr.msra.gmra.mxu1 %vm242_vm1, %v1045_v45 }
0x1e11   :  { %1736 = vmatpush3.bf16.msra.mxu1 %v2099_v9  ;;  %1739 = vmatprep.mubr.msk.bf16.mxu1 %vm2013_vm0, %v2012_v1 }
0x1e12   :  { %1737 = vmatprep.subr.bf16.mxu1 %v2012_v1 }
0x1e15   :  { %1738 = vmatpush3.bf16.msra.mxu1 %v2102_v10 }
0x1e16   :  { %1751 = vmatprep.subr.bf16.mxu1 %v2012_v1 }
0x1ed0   :  { %v1083_v49 = vpop.f32.mrf.mxu1 }
0x1ed1   :  { %v1089_v50 = vadd.f32 %v1083_v49, %v206_v48  ;;  %v2030_v49 = vmov 14  }
0x1ed2   :  { %v1725_v51 = vpop.f32.mrf.mxu1 }
0x1ed3   :  { %1896 = vtanh.f32 %v1089_v50  ;;  %v1566_v55 = vmul.f32 -1.442695, %v1089_v50 }
0x1ed4   :  { %v1086_v52 = vpop.f32.mrf.mxu1 }
0x1ed5   :  { %1898 = vpow2.f32 %v1566_v55 }
0x1ed6   :  { %v1726_v53 = vpop.f32.mrf.mxu1 }
0x1ee0   :  { %v1897_v54 = vpop.eup %1896 }
0x1ee1   :  { %1099 = vrot.lane.b32.xlu1 %v1897_v54, %s2015_s22 }
0x1ee2   :  { %v1899_v56 = vpop.eup %1898 }
0x1ee3   :  { %v1093_v57 = vadd.f32 1.0, %v1899_v56 }
0x1ee5   :  { %1900 = vrcp.f32 %v1093_v57 }
0x1ef2   :  { %v1901_v58 = vpop.eup %1900 }
0x1ef3   :  { %v1097_v62 = vmul.f32 %v1901_v58, %v1034_v40 }
0x1f53   :  { %v1100_v59 = vpop.permute.xlu1 %1099 }
0x1f54   :  { %v1102_v60 = vmul.f32 %v1901_v58, %v1100_v59 }
0x1f56   :  { %1104 = vrot.lane.b32.xlu1 %v1102_v60, %s2016_s23 }
0x1fc8   :  { %v1105_v63 = vpop.permute.xlu1 %1104 }
0x1fc9   :  { %v1107_v0 = vadd.f32 %v1105_v63, %v1097_v62 }
0x1fcb   :  { %1902 = vtanh.f32 %v1107_v0 }
0x1fd8   :  { %v1903_v2 = vpop.eup %1902 }
0x1fd9   :  { %1110 = vrot.lane.b32.xlu0 %v1903_v2, %s2015_s22 }
0x1fdd   :  { %210 = vperm.xlu0 %1804, %v2117_v11  }
0x204b   :  { %v1111_v3 = vpop.permute.xlu0 %1110 }
0x204c   :  { %v1113_v4 = vmul.f32 %v1901_v58, %v1111_v3 }
0x204e   :  { %v1114_v5 = vpack.c.bf16 %v1113_v4, %v1113_v4 }
0x2050   :  { %1117 = vrot.lane.b32.xlu1 %v1114_v5, %s2016_s23 }
0x2058   :  { %v211_v7 = vpop.permute.xlu0 %210 }
0x2059   :  { %v213_v8 = vmul.f32 %v2123_v16, %v211_v7  ;;  %v2029_v16 = vmov 13  }
0x205a   :  { %1805 = vset.pattern.permute.xlu0 %v2029_v16 }
0x205b   :  { %v214_v12 = vadd.f32 %v2125_v18, %v213_v8 }
0x20c2   :  { %v1118_v6 = vpop.permute.xlu1 %1117 }
0x20c3   :  { %1732 = vmatmul.mubr.msk.bf16.vlgmr.msra.gmra.mxu0 %vm242_vm1, %v1118_v6 }
0x20c4   :  { %1744 = vmatpush3.bf16.msra.mxu0 %v2099_v9  ;;  %1747 = vmatprep.mubr.msk.bf16.mxu0 %vm2013_vm0, %v2012_v1 }
0x20c5   :  { %1745 = vmatprep.subr.bf16.mxu0 %v2012_v1 }
0x20c8   :  { %1746 = vmatpush3.bf16.msra.mxu0 %v2102_v10 }
0x20c9   :  { %1759 = vmatprep.subr.bf16.mxu0 %v2012_v1 }
0x2183   :  { %v1156_v13 = vpop.f32.mrf.mxu0 }
0x2184   :  { %v1162_v14 = vadd.f32 %v1156_v13, %v214_v12  ;;  %v2031_v13 = vmov 15  }
0x2185   :  { %v1733_v15 = vpop.f32.mrf.mxu0 }
0x2186   :  { %1904 = vtanh.f32 %v1162_v14  ;;  %v1568_v21 = vmul.f32 -1.442695, %v1162_v14 }
0x2187   :  { %v1159_v17 = vpop.f32.mrf.mxu0 }
0x2188   :  { %1906 = vpow2.f32 %v1568_v21 }
0x2189   :  { %v1734_v19 = vpop.f32.mrf.mxu0 }
0x2193   :  { %v1905_v20 = vpop.eup %1904 }
0x2194   :  { %1172 = vrot.lane.b32.xlu1 %v1905_v20, %s2015_s22 }
0x2195   :  { %v1907_v22 = vpop.eup %1906 }
0x2196   :  { %v1166_v23 = vadd.f32 1.0, %v1907_v22 }
0x2198   :  { %1908 = vrcp.f32 %v1166_v23 }
0x21a5   :  { %v1909_v24 = vpop.eup %1908 }
0x21a6   :  { %v1170_v18 = vmul.f32 %v1909_v24, %v1107_v0 }
0x2206   :  { %v1173_v25 = vpop.permute.xlu1 %1172 }
0x2207   :  { %v1175_v26 = vmul.f32 %v1909_v24, %v1173_v25 }
0x2209   :  { %1177 = vrot.lane.b32.xlu1 %v1175_v26, %s2016_s23 }
0x227b   :  { %v1178_v27 = vpop.permute.xlu1 %1177 }
0x227c   :  { %v1180_v28 = vadd.f32 %v1178_v27, %v1170_v18 }
0x227e   :  { %1910 = vtanh.f32 %v1180_v28 }
0x228b   :  { %v1911_v29 = vpop.eup %1910 }
0x228c   :  { %1183 = vrot.lane.b32.xlu0 %v1911_v29, %s2015_s22 }
0x2290   :  { %218 = vperm.xlu0 %1805, %v2117_v11  }
0x2294   :  { %1806 = vset.pattern.permute.xlu0 %v2030_v49 }
0x22fe   :  { %v1184_v30 = vpop.permute.xlu0 %1183 }
0x22ff   :  { %v1186_v31 = vmul.f32 %v1909_v24, %v1184_v30 }
0x2301   :  { %v1187_v32 = vpack.c.bf16 %v1186_v31, %v1186_v31 }
0x2303   :  { %1190 = vrot.lane.b32.xlu1 %v1187_v32, %s2016_s23 }
0x230b   :  { %v219_v34 = vpop.permute.xlu0 %218 }
0x230c   :  { %v221_v36 = vmul.f32 %v2311_v35, %v219_v34 }
0x230e   :  { %v222_v38 = vadd.f32 %v2314_v37, %v221_v36 }
0x2375   :  { %v1191_v33 = vpop.permute.xlu1 %1190 }
0x2376   :  { %1740 = vmatmul.mubr.msk.bf16.vlgmr.msra.gmra.mxu1 %vm242_vm1, %v1191_v33 }
0x2377   :  { %1752 = vmatpush3.bf16.msra.mxu1 %v2099_v9  ;;  %1755 = vmatprep.mubr.msk.bf16.mxu1 %vm2013_vm0, %v2012_v1 }
0x2378   :  { %1753 = vmatprep.subr.bf16.mxu1 %v2012_v1 }
0x237b   :  { %1754 = vmatpush3.bf16.msra.mxu1 %v2102_v10 }
0x2436   :  { %v1229_v9 = vpop.f32.mrf.mxu1 }
0x2437   :  { %v1235_v39 = vadd.f32 %v1229_v9, %v222_v38  ;;  %v1408_v9 = vld [vmem:[%s2367_s4 + $0x10] sm:$0xff] }
0x2438   :  { %v1741_v40 = vpop.f32.mrf.mxu1 }
0x2439   :  { %1912 = vtanh.f32 %v1235_v39  ;;  %v1570_v10 = vmul.f32 -1.442695, %v1235_v39  ;;  %v1409_v39 = vld [vmem:[%s2367_s4 + $0x18] sm:$0xff]  ;;  %v1406_v40 = vld [vmem:[%s2367_s4] sm:$0xff] }
0x243a   :  { %v1232_v41 = vpop.f32.mrf.mxu1 }
0x243b   :  { %1914 = vpow2.f32 %v1570_v10  ;;  %v1412_v41 = vpack.c.bf16 %v1409_v39, %v1408_v9 }
0x243c   :  { %v1742_v42 = vpop.f32.mrf.mxu1 }
0x243d   :  { %v1407_v42 = vld [vmem:[%s2367_s4 + $0x8] sm:$0xff] }
0x2446   :  { %v1913_v43 = vpop.eup %1912 }
0x2447   :  { %1245 = vrot.lane.b32.xlu1 %v1913_v43, %s2015_s22  ;;  %v1411_v43 = vpack.c.bf16 %v1407_v42, %v1406_v40 }
0x2448   :  { %v1915_v44 = vpop.eup %1914 }
0x2449   :  { %v1239_v45 = vadd.f32 1.0, %v1915_v44 }
0x244b   :  { %1916 = vrcp.f32 %v1239_v45 }
0x2458   :  { %v1917_v46 = vpop.eup %1916 }
0x2459   :  { %v1243_v50 = vmul.f32 %v1917_v46, %v1180_v28 }
0x24b9   :  { %v1246_v47 = vpop.permute.xlu1 %1245 }
0x24ba   :  { %v1248_v48 = vmul.f32 %v1917_v46, %v1246_v47 }
0x24bc   :  { %1250 = vrot.lane.b32.xlu1 %v1248_v48, %s2016_s23  ;;  %v1575_v48 = vld [vmem:[%s2368_s5] ss:$0 sm:$0xff]  ;;  %s2032_s5 = smov [#allocation9]  }
0x24bd   :  { %s1532_s7 = sshll.u32 %s2032_s5, 4  ;;  %s1533_s7 = int_to_ptr.vmem [resolvable:$true] %s1532_s7 }
0x24be   :  { %s1986_s14 = scalar_lea.vmem %s1533_s7, 32  ;;  %p1987_p11 = scmp.lt.s32.totalorder %s1533_s7, %s1533_s7 }
0x252e   :  { %v1251_v51 = vpop.permute.xlu1 %1250 }
0x252f   :  { %v1253_v52 = vadd.f32 %v1251_v51, %v1243_v50 }
0x2531   :  { %1918 = vtanh.f32 %v1253_v52 }
0x253e   :  { %v1919_v53 = vpop.eup %1918 }
0x253f   :  { %1256 = vrot.lane.b32.xlu0 %v1919_v53, %s2015_s22 }
0x2543   :  { %226 = vperm.xlu0 %1806, %v2117_v11  }
0x2547   :  { %1807 = vset.pattern.permute.xlu0 %v2031_v13 }
0x25b1   :  { %v1257_v54 = vpop.permute.xlu0 %1256 }
0x25b2   :  { %v1259_v55 = vmul.f32 %v1917_v46, %v1257_v54 }
0x25b4   :  { %v1260_v56 = vpack.c.bf16 %v1259_v55, %v1259_v55 }
0x25b6   :  { %1263 = vrot.lane.b32.xlu1 %v1260_v56, %s2016_s23 }
0x25be   :  { %v227_v58 = vpop.permute.xlu0 %226 }
0x25bf   :  { %v229_v59 = vmul.f32 %v2311_v35, %v227_v58 }
0x25c1   :  { %v230_v60 = vadd.f32 %v2314_v37, %v229_v59 }
0x2628   :  { %v1264_v57 = vpop.permute.xlu1 %1263 }
0x2629   :  { %1748 = vmatmul.mubr.msk.bf16.vlgmr.msra.gmra.mxu0 %vm242_vm1, %v1264_v57  ;;  %v1578_v57 = vld [vmem:[#allocation3] ss:$0 sm:$0xff] }
0x262a   :  { %1763 = vmatprep.mubr.msk.bf16.mxu0 %vm2013_vm0, %v2012_v1  ;;  %1760 = vmatpush3.bf16.msra.mxu0 %v1412_v41 }
0x262b   :  { %1761 = vmatprep.subr.bf16.mxu0 %v2012_v1  ;;  %v1577_v1 = vld [vmem:[%s2369_s6] ss:$0 sm:$0xff]  ;;  %s1982_s6 = scalar_lea.vmem %s1533_s7, 16 }
0x262c   :  { %p1983_p10 = scmp.ne.s32.totalorder %s1533_s7, %s1982_s6  ;;  %p1988_p12 = scmp.lt.s32.totalorder %s1986_s14, %s1982_s6 }
0x262e   :  { %1762 = vmatpush3.bf16.msra.mxu0 %v1411_v43  ;;  %p1989_p13 = por %p1988_p12, %p1987_p11 }
0x2630   :  { %p1990_p0 = pnand %p1989_p13, %p1983_p10 }
0x26e9   :  { %v1302_v61 = vpop.f32.mrf.mxu0 }
0x26ea   :  { %v1308_v62 = vadd.f32 %v1302_v61, %v230_v60 }
0x26eb   :  { %v1749_v63 = vpop.f32.mrf.mxu0 }
0x26ec   :  { %1920 = vtanh.f32 %v1308_v62  ;;  %v1572_v4 = vmul.f32 -1.442695, %v1308_v62 }
0x26ed   :  { %v1305_v0 = vpop.f32.mrf.mxu0 }
0x26ee   :  { %1922 = vpow2.f32 %v1572_v4 }
0x26ef   :  { %v1750_v2 = vpop.f32.mrf.mxu0 }
0x26f9   :  { %v1921_v3 = vpop.eup %1920 }
0x26fa   :  { %1318 = vrot.lane.b32.xlu1 %v1921_v3, %s2015_s22 }
0x26fb   :  { %v1923_v5 = vpop.eup %1922 }
0x26fc   :  { %v1312_v6 = vadd.f32 1.0, %v1923_v5 }
0x26fe   :  { %1924 = vrcp.f32 %v1312_v6 }
0x270b   :  { %v1925_v7 = vpop.eup %1924 }
0x270c   :  { %v1316_v14 = vmul.f32 %v1925_v7, %v1253_v52 }
0x276c   :  { %v1319_v8 = vpop.permute.xlu1 %1318 }
0x276d   :  { %v1321_v12 = vmul.f32 %v1925_v7, %v1319_v8 }
0x276f   :  { %1323 = vrot.lane.b32.xlu1 %v1321_v12, %s2016_s23 }
0x27e1   :  { %v1324_v15 = vpop.permute.xlu1 %1323 }
0x27e2   :  { %v1326_v17 = vadd.f32 %v1324_v15, %v1316_v14 }
0x27e4   :  { %1926 = vtanh.f32 %v1326_v17 }
0x27f1   :  { %v1927_v19 = vpop.eup %1926 }
0x27f2   :  { %1329 = vrot.lane.b32.xlu0 %v1927_v19, %s2015_s22 }
0x27f6   :  { %234 = vperm.xlu0 %1807, %v2117_v11  }
0x2864   :  { %v1330_v20 = vpop.permute.xlu0 %1329 }
0x2865   :  { %v1332_v21 = vmul.f32 %v1925_v7, %v1330_v20 }
0x2867   :  { %v1333_v22 = vpack.c.bf16 %v1332_v21, %v1332_v21 }
0x2869   :  { %1336 = vrot.lane.b32.xlu1 %v1333_v22, %s2016_s23 }
0x2871   :  { %v235_v24 = vpop.permute.xlu0 %234 }
0x2872   :  { %v237_v25 = vmul.f32 %v2311_v35, %v235_v24 }
0x2874   :  { %v238_v26 = vadd.f32 %v2314_v37, %v237_v25 }
0x28db   :  { %v1337_v23 = vpop.permute.xlu1 %1336 }
0x28dc   :  { %1756 = vmatmul.mubr.msk.bf16.vlgmr.msra.gmra.mxu1 %vm242_vm1, %v1337_v23 }
0x299c   :  { %v1375_v16 = vpop.f32.mrf.mxu1 }
0x299d   :  { %v1381_v18 = vadd.f32 %v1375_v16, %v238_v26 }
0x299e   :  { %v1757_v27 = vpop.f32.mrf.mxu1 }
0x299f   :  { %1928 = vtanh.f32 %v1381_v18  ;;  %v1574_v30 = vmul.f32 -1.442695, %v1381_v18 }
0x29a0   :  { %v1378_v28 = vpop.f32.mrf.mxu1 }
0x29a1   :  { %1930 = vpow2.f32 %v1574_v30 }
0x29a2   :  { %v1758_v29 = vpop.f32.mrf.mxu1 }
0x29ac   :  { %v1929_v11 = vpop.eup %1928 }
0x29ad   :  { %1391 = vrot.lane.b32.xlu1 %v1929_v11, %s2015_s22 }
0x29ae   :  { %v1931_v31 = vpop.eup %1930 }
0x29af   :  { %v1385_v32 = vadd.f32 1.0, %v1931_v31 }
0x29b1   :  { %1932 = vrcp.f32 %v1385_v32 }
0x29be   :  { %v1933_v33 = vpop.eup %1932 }
0x29bf   :  { %v1389_v35 = vmul.f32 %v1933_v33, %v1326_v17 }
0x2a1f   :  { %v1392_v34 = vpop.permute.xlu1 %1391 }
0x2a20   :  { %v1394_v36 = vmul.f32 %v1933_v33, %v1392_v34 }
0x2a22   :  { %1396 = vrot.lane.b32.xlu1 %v1394_v36, %s2016_s23 }
0x2a94   :  { %v1397_v37 = vpop.permute.xlu1 %1396 }
0x2a95   :  { %v1399_v38 = vadd.f32 %v1397_v37, %v1389_v35 }
0x2a97   :  { %1934 = vtanh.f32 %v1399_v38 }
0x2aa4   :  { %v1935_v10 = vpop.eup %1934 }
0x2aa5   :  { %1402 = vrot.lane.b32.xlu0 %v1935_v10, %s2015_s22 }
0x2b17   :  { %v1403_v44 = vpop.permute.xlu0 %1402 }
0x2b18   :  { %v1405_v45 = vmul.f32 %v1933_v33, %v1403_v44 }
0x2b1a   :  { %v1410_v46 = vpack.c.bf16 %v1405_v45, %v1405_v45 }
0x2b1c   :  { %1421 = vrot.lane.b32.xlu1 %v1410_v46, %s2016_s23 }
0x2b8e   :  { %v1422_v47 = vpop.permute.xlu1 %1421 }
0x2b8f   :  { %1764 = vmatmul.mubr.msk.bf16.vlgmr.msra.gmra.mxu0 %vm242_vm1, %v1422_v47 }
0x2c4f   :  { %v1460_v49 = vpop.f32.mrf.mxu0 }
0x2c50   :  { %v1461_v50 = vadd.f32 %v1575_v48, %v1460_v49 }
0x2c51   :  { %v1765_v51 = vpop.f32.mrf.mxu0 }
0x2c52   :  { %v1466_v52 = vmax.f32 %v1461_v50, 0.0 }
0x2c53   :  { %v1463_v53 = vpop.f32.mrf.mxu0 }
0x2c54   :  { %v1474_v54 = vmul.f32 %v1577_v1, %v1466_v52 }
0x2c55   :  { %v1766_v55 = vpop.f32.mrf.mxu0 }
0x2c56   :  { %v1475_v56 = vsel %vm242_vm1, %v1474_v54, 0.0 }
0x2c57   :  { %1476 = vadd.xlane.f32.xlu0 %v1475_v56 }
0x2ce0   :  { %v1477_v58 = vpop.xlane.xlu0 %1476 }
0x2ce1   :  { %v1485_v59 = vadd.f32 %v1578_v57, %v1477_v58 }
0x2ce3   :  { %v1579_v60 = vmul.f32 -1.442695, %v1485_v59 }
0x2ce5   :  { %1936 = vpow2.f32 %v1579_v60 }
0x2cf2   :  { %v1937_v61 = vpop.eup %1936 }
0x2cf3   :  { %v1489_v62 = vadd.f32 1.0, %v1937_v61 }
0x2cf5   :  { %1938 = vrcp.f32 %v1489_v62 }
0x2d02   :  { %v1939_v63 = vpop.eup %1938 }
0x2d03   :  { %1492 = vxpose.xlu1.b32.start.end [1/1] (short) (narrow) %v1939_v63, 8 }
0x2d7f   :  { %v1508_v0 = vpop.trf.xlu1 }
0x2d80   :  { %1525 = vst.msk [vmem:[#allocation9] sm:$0x1] %vm1524_vm2, %v1508_v0 }
0x2d81   :  { %1993 = shalt.err (!%p1990_p0)
}
0x2d82   :  { %1535 = dma.vmem_to_hbm [thread:$0]  %s1533_s7, 16, %s2371_s8, [#allocation6]  }
0x2d83   :  { %2006 = dma.done.wait [#allocation6], 16  }
0x2d84   :  { %2007 = vsyncadd [#allocation6], 4294967280 }
0x2d85   :  { %1539 = vsyncpa [#allocation5], 1 }
0x2d86   :  { %1540 = vsyncpa [#allocation8], 1 }
0x2d87   :  { %1541 = vsyncpa [#allocation6], 1 }

</bundles_post_ra>
